<compile_context>
chip_gen: v5e
topology: v5e:2x2
jax: 0.10.0
libtpu: 0.0.40
codegen_flags: <defaults>
</compile_context>

<pallas_src>
import numpy as np
import jax
import jax.numpy as jnp
from jax.experimental import pallas as pl
from jax.experimental.pallas import tpu as pltpu


# --------------------------- architecture constants -------------------------
H = W = 16
C_IN = 4
C1, C2 = 8, 16
HO1 = WO1 = 8                 # conv1 output spatial (stride 2, pad 1)
HO2 = WO2 = 4                 # conv2 output spatial
F_IN = H * W * C_IN           # 1024
F1 = HO1 * WO1 * C1           # 512
F2 = HO2 * WO2 * C2           # 256
F_FC = 32
F_HEADS = 1 + 2 + 5           # age | gender logits | ethnicity logits = 8
F_PAD = 128                   # lane-dense padded width for FC + heads


def _round_up(a, m):
    return -(-a // m) * m


# ----------------------------------------------------------------------------
# Fused Pallas kernel: conv1 + conv2 (dense GEMMs) + shared FC + fused heads
# ----------------------------------------------------------------------------
def _fused_forward_kernel(x_ref, w1_ref, b1_ref, w2_ref, b2_ref,
                          wf_ref, bf_ref, wh_ref, bh_ref, o_ref):
    # conv1 (dense-lowered) + ReLU          [bm,1024]x[1024,512]
    h = jnp.dot(x_ref[...], w1_ref[...], preferred_element_type=jnp.float32)
    h = jnp.maximum(h + b1_ref[...], 0.0).astype(jnp.bfloat16)
    # conv2 (dense-lowered) + ReLU          [bm,512]x[512,256]
    h = jnp.dot(h, w2_ref[...], preferred_element_type=jnp.float32)
    h = jnp.maximum(h + b2_ref[...], 0.0).astype(jnp.bfloat16)
    # shared FC + ReLU (lane-padded to 128) [bm,256]x[256,128]
    h = jnp.dot(h, wf_ref[...], preferred_element_type=jnp.float32)
    h = jnp.maximum(h + bf_ref[...], 0.0).astype(jnp.bfloat16)
    # fused heads (lane-padded to 128): [age | gender(2) | ethnicity(5) | zeros]
    o_ref[...] = jnp.dot(h, wh_ref[...], preferred_element_type=jnp.float32) + bh_ref[...]


def fused_forward(x_flat_bf16, dp, *, block_rows=512):
    """Whole synthetic model in one pallas_call.  x_flat_bf16: [N, F_IN] bf16 (NCHW flatten order).

    Returns [N, F_PAD] f32; valid logits live in columns 0:F_HEADS.
    """
    n = x_flat_bf16.shape[0]

    # Pad rows to the 8-sublane tile; aim for >= 2 grid steps once there is more than one tile
    # (keeps both TensorCores busy on v7x); cap the tile at block_rows for VMEM budgeting.
    n8 = max(8, _round_up(n, 8))
    if n8 > 8:
        bm = min(block_rows, _round_up(pl.cdiv(n8, 2), 8))
    else:
        bm = 8
    n_pad = _round_up(n8, bm)
    if n_pad != n:
        x_flat_bf16 = jnp.pad(x_flat_bf16, ((0, n_pad - n), (0, 0)))

    args = (x_flat_bf16, dp["w1d"], dp["b1d"], dp["w2d"], dp["b2d"],
            dp["wf"], dp["bf"], dp["wh"], dp["bh"])

    x_spec = pl.BlockSpec((bm, F_IN), lambda i: (i, 0))
    out_spec = pl.BlockSpec((bm, F_PAD), lambda i: (i, 0))

    def resident(a):  # weights/biases: whole array, constant index map -> stay VMEM-resident
        return pl.BlockSpec(a.shape, lambda i: (0, 0))

    flops = 2 * n_pad * (F_IN * F1 + F1 * F2 + F2 * F_PAD + F_PAD * F_PAD)
    bytes_accessed = sum(int(a.size) * a.dtype.itemsize for a in args) + n_pad * F_PAD * 4

    out = pl.pallas_call(
        _fused_forward_kernel,
        out_shape=jax.ShapeDtypeStruct((n_pad, F_PAD), jnp.float32),
        grid=(n_pad // bm,),
        in_specs=[x_spec] + [resident(a) for a in args[1:]],
        out_specs=out_spec,
        compiler_params=pltpu.CompilerParams(
            dimension_semantics=("parallel",),
            vmem_limit_bytes=32 * 1024 * 1024),
        cost_estimate=pl.CostEstimate(flops=flops, transcendentals=0,
                                      bytes_accessed=bytes_accessed),
    )(*args)
    return out[:n]


# ----------------------------------------------------------------------------
# One-time weight lowering: zero-padded strided 3x3 conv  ->  exact dense matrix
# ----------------------------------------------------------------------------
def _conv_to_dense(w_conv, b_conv, height, width, stride=2, pad=1, rows_channels_first=False):
    """Dense [h*w*cin, ho*wo*cout] matrix equivalent to the conv.

    rows_channels_first=True  -> row order (cin, y, x)  == native NCHW flatten (no transpose needed)
    rows_channels_first=False -> row order (y, x, cin)  == channels-last flatten
    Column order is always (i, j, cout)."""
    kh, kw, cin, cout = w_conv.shape
    ho = (height + 2 * pad - kh) // stride + 1
    wo = (width + 2 * pad - kw) // stride + 1
    wc = np.asarray(w_conv, np.float32)
    dense = np.zeros((height * width * cin, ho * wo * cout), np.float32)
    for i in range(ho):
        for j in range(wo):
            c0 = (i * wo + j) * cout
            for ki in range(kh):
                for kj in range(kw):
                    y = i * stride + ki - pad
                    x = j * stride + kj - pad
                    if 0 <= y < height and 0 <= x < width:
                        if rows_channels_first:
                            for c in range(cin):
                                r = c * height * width + y * width + x
                                dense[r, c0:c0 + cout] = wc[ki, kj, c]
                        else:
                            r0 = (y * width + x) * cin
                            dense[r0:r0 + cin, c0:c0 + cout] = wc[ki, kj]
    bias = np.tile(np.asarray(b_conv, np.float32), ho * wo)[None, :]
    return dense, bias


def lower_params(p):
    """Lower conv weights to dense GEMM form, fuse + lane-pad the heads, cast weights to bf16."""
    # conv1: rows in NCHW-flatten order (kills the wrapper transpose); cols (i, j, cout)
    w1d, b1d = _conv_to_dense(p["w1"], p["b1"], H, W, rows_channels_first=True)    # [1024,512],[1,512]
    # conv2: rows (y, x, cin) == conv1 column order
    w2d, b2d = _conv_to_dense(p["w2"], p["b2"], HO1, WO1, rows_channels_first=False)  # [512,256],[1,256]

    # shared FC padded 32 -> 128 lanes
    wf = np.zeros((F2, F_PAD), np.float32)
    wf[:, :F_FC] = np.asarray(p["wf"], np.float32)
    bf = np.zeros((1, F_PAD), np.float32)
    bf[:, :F_FC] = np.asarray(p["bf"], np.float32)

    # fused heads [age | gender | ethnicity], padded to [128, 128]
    wh = np.zeros((F_PAD, F_PAD), np.float32)
    wh[:F_FC, :F_HEADS] = np.concatenate(
        [np.asarray(p["wa"]), np.asarray(p["wg"]), np.asarray(p["we"])], axis=1)
    bh = np.zeros((1, F_PAD), np.float32)
    bh[:, :F_HEADS] = np.concatenate(
        [np.asarray(p["ba"]), np.asarray(p["bg"]), np.asarray(p["be"])], axis=1)

    return {
        "w1d": jnp.asarray(w1d, jnp.bfloat16), "b1d": jnp.asarray(b1d, jnp.float32),
        "w2d": jnp.asarray(w2d, jnp.bfloat16), "b2d": jnp.asarray(b2d, jnp.float32),
        "wf":  jnp.asarray(wf,  jnp.bfloat16), "bf":  jnp.asarray(bf,  jnp.float32),
        "wh":  jnp.asarray(wh,  jnp.bfloat16), "bh":  jnp.asarray(bh,  jnp.float32),
    }


# ----------------------------------------------------------------------------
# Deterministic synthetic parameters (shapes implied by the 3-head forward)
# ----------------------------------------------------------------------------
def init_params(key):
    ks = jax.random.split(key, 10)
    rnd = lambda k_, s, sc: jax.random.normal(k_, s, jnp.float32) * sc
    return {
        # conv1: 3x3, stride 2, pad 1, 4 -> 8   (layout: (kh, kw, cin, cout))
        "w1": rnd(ks[0], (3, 3, C_IN, C1), 0.10), "b1": rnd(ks[1], (C1,), 0.01),
        # conv2: 3x3, stride 2, pad 1, 8 -> 16
        "w2": rnd(ks[2], (3, 3, C1, C2), 0.10), "b2": rnd(ks[3], (C2,), 0.01),
        # shared FC: 4*4*16 = 256 -> 32
        "wf": rnd(ks[4], (F2, F_FC), 0.05), "bf": rnd(ks[5], (1, F_FC), 0.01),
        # heads
        "wa": rnd(ks[6], (F_FC, 1), 0.10), "ba": rnd(ks[7], (1, 1), 0.01),
        "wg": rnd(ks[8], (F_FC, 2), 0.10), "bg": jnp.zeros((1, 2), jnp.float32),
        "we": rnd(ks[9], (F_FC, 5), 0.10), "be": jnp.zeros((1, 5), jnp.float32),
    }


# ----------------------------------------------------------------------------
# Forward pass == EmotionRecognitionModelWithScores.forward:
#   age, gender, ethnicity = self.model(x); return (age, gender, ethnicity)
# ----------------------------------------------------------------------------
def emotion_recognition_with_scores_forward(x_nchw, dense_params):
    n = x_nchw.shape[0]
    # NCHW flatten is free (no transpose): conv1 dense-weight rows were built channel-major.
    x = x_nchw.astype(jnp.bfloat16).reshape(n, F_IN)
    out = fused_forward(x, dense_params)                     # [N, 128] f32, one kernel launch
    age, gender, ethnicity = out[:, 0:1], out[:, 1:3], out[:, 3:8]
    return age, gender, ethnicity


# Plain-JAX reference (same bf16 dense params, same f32 accumulation) for a sanity check.
def _reference_forward(x_nchw, dp):
    n = x_nchw.shape[0]
    x = x_nchw.astype(jnp.bfloat16).reshape(n, F_IN)
    h = jnp.maximum(jnp.dot(x, dp["w1d"], preferred_element_type=jnp.float32) + dp["b1d"], 0.0)
    h = jnp.maximum(jnp.dot(h.astype(jnp.bfloat16), dp["w2d"],
                            preferred_element_type=jnp.float32) + dp["b2d"], 0.0)
    h = jnp.maximum(jnp.dot(h.astype(jnp.bfloat16), dp["wf"],
                            preferred_element_type=jnp.float32) + dp["bf"], 0.0)
    out = jnp.dot(h.astype(jnp.bfloat16), dp["wh"], preferred_element_type=jnp.float32) + dp["bh"]
    return out[:, 0:1], out[:, 1:3], out[:, 3:8]


if __name__ == "__main__":
    params = init_params(jax.random.PRNGKey(1))
    dense_params = lower_params(params)     # one-time weight lowering (convs -> dense, bf16, padded)

    x = jax.random.normal(jax.random.PRNGKey(0), (2, C_IN, H, W), jnp.float32)  # NCHW

    fwd = jax.jit(emotion_recognition_with_scores_forward)
    age, gender, ethnicity = fwd(x, dense_params)
    jax.block_until_ready((age, gender, ethnicity))

    assert age.shape == (2, 1) and gender.shape == (2, 2) and ethnicity.shape == (2, 5)
    assert age.dtype == jnp.float32 and gender.dtype == jnp.float32 and ethnicity.dtype == jnp.float32

    ra, rg, re = _reference_forward(x, dense_params)
    np.testing.assert_allclose(np.asarray(age), np.asarray(ra), rtol=2e-2, atol=2e-2)
    np.testing.assert_allclose(np.asarray(gender), np.asarray(rg), rtol=2e-2, atol=2e-2)
    np.testing.assert_allclose(np.asarray(ethnicity), np.asarray(re), rtol=2e-2, atol=2e-2)

    print("KERNEL_OK")
</pallas_src>

<mosaic_0001>
module attributes {stable_mosaic.version = 11 : i64} {
  func.func @_fused_forward_kernel(%arg0: i32, %arg1: memref<8x1024xbf16, #tpu.memory_space<vmem>>, %arg2: memref<1024x512xbf16, #tpu.memory_space<vmem>>, %arg3: memref<1x512xf32, #tpu.memory_space<vmem>>, %arg4: memref<512x256xbf16, #tpu.memory_space<vmem>>, %arg5: memref<1x256xf32, #tpu.memory_space<vmem>>, %arg6: memref<256x128xbf16, #tpu.memory_space<vmem>>, %arg7: memref<1x128xf32, #tpu.memory_space<vmem>>, %arg8: memref<128x128xbf16, #tpu.memory_space<vmem>>, %arg9: memref<1x128xf32, #tpu.memory_space<vmem>>, %arg10: memref<8x128xf32, #tpu.memory_space<vmem>>) attributes {dimension_semantics = [#tpu.dimension_semantics<parallel>], iteration_bounds = array<i64: 1>, scalar_prefetch = 0 : i64, scratch_operands = 0 : i64, tpu.core_type = #tpu.core_type<tc>, window_params = [{transform_indices = @transform_0, window_bounds = array<i64: 8, 1024>}, {pipeline_mode = #tpu.pipeline_mode<synchronous>, transform_indices = @transform_1, window_bounds = array<i64: 1024, 512>}, {pipeline_mode = #tpu.pipeline_mode<synchronous>, transform_indices = @transform_2, window_bounds = array<i64: 1, 512>}, {pipeline_mode = #tpu.pipeline_mode<synchronous>, transform_indices = @transform_3, window_bounds = array<i64: 512, 256>}, {pipeline_mode = #tpu.pipeline_mode<synchronous>, transform_indices = @transform_4, window_bounds = array<i64: 1, 256>}, {pipeline_mode = #tpu.pipeline_mode<synchronous>, transform_indices = @transform_5, window_bounds = array<i64: 256, 128>}, {pipeline_mode = #tpu.pipeline_mode<synchronous>, transform_indices = @transform_6, window_bounds = array<i64: 1, 128>}, {pipeline_mode = #tpu.pipeline_mode<synchronous>, transform_indices = @transform_7, window_bounds = array<i64: 128, 128>}, {pipeline_mode = #tpu.pipeline_mode<synchronous>, transform_indices = @transform_8, window_bounds = array<i64: 1, 128>}, {transform_indices = @transform_9, window_bounds = array<i64: 8, 128>}]} {
    %c0 = arith.constant 0 : index
    %c0_0 = arith.constant 0 : index
    %0 = vector.load %arg1[%c0, %c0_0] : memref<8x1024xbf16, #tpu.memory_space<vmem>>, vector<8x1024xbf16>
    %c0_1 = arith.constant 0 : index
    %c0_2 = arith.constant 0 : index
    %1 = vector.load %arg2[%c0_1, %c0_2] : memref<1024x512xbf16, #tpu.memory_space<vmem>>, vector<1024x512xbf16>
    %cst = arith.constant dense<0.000000e+00> : vector<8x512xf32>
    %2 = tpu.matmul %0, %1, %cst {dimension_numbers = #tpu.dot_dimension_numbers<[1], [0], [0], [1], [0, 0, 1, 1], [], []>} : vector<8x1024xbf16>, vector<1024x512xbf16>, vector<8x512xf32> -> vector<8x512xf32>
    %c0_3 = arith.constant 0 : index
    %c0_4 = arith.constant 0 : index
    %3 = vector.load %arg3[%c0_3, %c0_4] : memref<1x512xf32, #tpu.memory_space<vmem>>, vector<1x512xf32>
    %4 = vector.broadcast %3 : vector<1x512xf32> to vector<8x512xf32>
    %5 = arith.addf %2, %4 : vector<8x512xf32>
    %cst_5 = arith.constant 0.000000e+00 : f32
    %6 = vector.broadcast %cst_5 : f32 to vector<8x512xf32>
    %7 = arith.maximumf %5, %6 : vector<8x512xf32>
    %8 = arith.truncf %7 : vector<8x512xf32> to vector<8x512xbf16>
    %c0_6 = arith.constant 0 : index
    %c0_7 = arith.constant 0 : index
    %9 = vector.load %arg4[%c0_6, %c0_7] : memref<512x256xbf16, #tpu.memory_space<vmem>>, vector<512x256xbf16>
    %cst_8 = arith.constant dense<0.000000e+00> : vector<8x256xf32>
    %10 = tpu.matmul %8, %9, %cst_8 {dimension_numbers = #tpu.dot_dimension_numbers<[1], [0], [0], [1], [0, 0, 1, 1], [], []>} : vector<8x512xbf16>, vector<512x256xbf16>, vector<8x256xf32> -> vector<8x256xf32>
    %c0_9 = arith.constant 0 : index
    %c0_10 = arith.constant 0 : index
    %11 = vector.load %arg5[%c0_9, %c0_10] : memref<1x256xf32, #tpu.memory_space<vmem>>, vector<1x256xf32>
    %12 = vector.broadcast %11 : vector<1x256xf32> to vector<8x256xf32>
    %13 = arith.addf %10, %12 : vector<8x256xf32>
    %cst_11 = arith.constant 0.000000e+00 : f32
    %14 = vector.broadcast %cst_11 : f32 to vector<8x256xf32>
    %15 = arith.maximumf %13, %14 : vector<8x256xf32>
    %16 = arith.truncf %15 : vector<8x256xf32> to vector<8x256xbf16>
    %c0_12 = arith.constant 0 : index
    %c0_13 = arith.constant 0 : index
    %17 = vector.load %arg6[%c0_12, %c0_13] : memref<256x128xbf16, #tpu.memory_space<vmem>>, vector<256x128xbf16>
    %cst_14 = arith.constant dense<0.000000e+00> : vector<8x128xf32>
    %18 = tpu.matmul %16, %17, %cst_14 {dimension_numbers = #tpu.dot_dimension_numbers<[1], [0], [0], [1], [0, 0, 1, 1], [], []>} : vector<8x256xbf16>, vector<256x128xbf16>, vector<8x128xf32> -> vector<8x128xf32>
    %c0_15 = arith.constant 0 : index
    %c0_16 = arith.constant 0 : index
    %19 = vector.load %arg7[%c0_15, %c0_16] : memref<1x128xf32, #tpu.memory_space<vmem>>, vector<1x128xf32>
    %20 = vector.broadcast %19 : vector<1x128xf32> to vector<8x128xf32>
    %21 = arith.addf %18, %20 : vector<8x128xf32>
    %cst_17 = arith.constant 0.000000e+00 : f32
    %22 = vector.broadcast %cst_17 : f32 to vector<8x128xf32>
    %23 = arith.maximumf %21, %22 : vector<8x128xf32>
    %24 = arith.truncf %23 : vector<8x128xf32> to vector<8x128xbf16>
    %c0_18 = arith.constant 0 : index
    %c0_19 = arith.constant 0 : index
    %25 = vector.load %arg8[%c0_18, %c0_19] : memref<128x128xbf16, #tpu.memory_space<vmem>>, vector<128x128xbf16>
    %cst_20 = arith.constant dense<0.000000e+00> : vector<8x128xf32>
    %26 = tpu.matmul %24, %25, %cst_20 {dimension_numbers = #tpu.dot_dimension_numbers<[1], [0], [0], [1], [0, 0, 1, 1], [], []>} : vector<8x128xbf16>, vector<128x128xbf16>, vector<8x128xf32> -> vector<8x128xf32>
    %c0_21 = arith.constant 0 : index
    %c0_22 = arith.constant 0 : index
    %27 = vector.load %arg9[%c0_21, %c0_22] : memref<1x128xf32, #tpu.memory_space<vmem>>, vector<1x128xf32>
    %28 = vector.broadcast %27 : vector<1x128xf32> to vector<8x128xf32>
    %29 = arith.addf %26, %28 : vector<8x128xf32>
    %c0_23 = arith.constant 0 : index
    %c0_24 = arith.constant 0 : index
    %30 = vector.load %arg10[%c0_23, %c0_24] : memref<8x128xf32, #tpu.memory_space<vmem>>, vector<8x128xf32>
    tpu.vector_store %arg10[%c0_23, %c0_24], %29 {strides = array<i32>} : memref<8x128xf32, #tpu.memory_space<vmem>>, vector<8x128xf32>,
    return
  }
  func.func @transform_0(%arg0: i32) -> (i32, i32) {
    %c0_i32 = arith.constant 0 : i32
    %c0_i32_0 = arith.constant 0 : i32
    return %arg0, %c0_i32 : i32, i32
  }
  func.func @transform_1(%arg0: i32) -> (i32, i32) {
    %c0_i32 = arith.constant 0 : i32
    %c0_i32_0 = arith.constant 0 : i32
    %c0_i32_1 = arith.constant 0 : i32
    return %c0_i32, %c0_i32_0 : i32, i32
  }
  func.func @transform_2(%arg0: i32) -> (i32, i32) {
    %c0_i32 = arith.constant 0 : i32
    %c0_i32_0 = arith.constant 0 : i32
    %c0_i32_1 = arith.constant 0 : i32
    return %c0_i32, %c0_i32_0 : i32, i32
  }
  func.func @transform_3(%arg0: i32) -> (i32, i32) {
    %c0_i32 = arith.constant 0 : i32
    %c0_i32_0 = arith.constant 0 : i32
    %c0_i32_1 = arith.constant 0 : i32
    return %c0_i32, %c0_i32_0 : i32, i32
  }
  func.func @transform_4(%arg0: i32) -> (i32, i32) {
    %c0_i32 = arith.constant 0 : i32
    %c0_i32_0 = arith.constant 0 : i32
    %c0_i32_1 = arith.constant 0 : i32
    return %c0_i32, %c0_i32_0 : i32, i32
  }
  func.func @transform_5(%arg0: i32) -> (i32, i32) {
    %c0_i32 = arith.constant 0 : i32
    %c0_i32_0 = arith.constant 0 : i32
    %c0_i32_1 = arith.constant 0 : i32
    return %c0_i32, %c0_i32_0 : i32, i32
  }
  func.func @transform_6(%arg0: i32) -> (i32, i32) {
    %c0_i32 = arith.constant 0 : i32
    %c0_i32_0 = arith.constant 0 : i32
    %c0_i32_1 = arith.constant 0 : i32
    return %c0_i32, %c0_i32_0 : i32, i32
  }
  func.func @transform_7(%arg0: i32) -> (i32, i32) {
    %c0_i32 = arith.constant 0 : i32
    %c0_i32_0 = arith.constant 0 : i32
    %c0_i32_1 = arith.constant 0 : i32
    return %c0_i32, %c0_i32_0 : i32, i32
  }
  func.func @transform_8(%arg0: i32) -> (i32, i32) {
    %c0_i32 = arith.constant 0 : i32
    %c0_i32_0 = arith.constant 0 : i32
    %c0_i32_1 = arith.constant 0 : i32
    return %c0_i32, %c0_i32_0 : i32, i32
  }
  func.func @transform_9(%arg0: i32) -> (i32, i32) {
    %c0_i32 = arith.constant 0 : i32
    %c0_i32_0 = arith.constant 0 : i32
    return %arg0, %c0_i32 : i32, i32
  }
}

</mosaic_0001>

<bundles_post_ra>
// kernel: emotion_recognition_with_scores_forward.1
= control target key start
LH: loop header
LB: loop body
LE: loop exit
PB: predicated region body
PF: predicated region fallthrough
CT: control target
= control target key end

     0   :  { %14 = vsyncpa [#allocation3], 0  ;;  %s4842_s0 = inlined_call_operand.vmem [shape: bf16[8,1024], index: 0, kind: input, shape index: {}]   ;;  %s4843_s1 = inlined_call_operand.hbm [shape: bf16[1024,512], index: 1, kind: input, shape index: {}]   ;;  %s4844_s2 = inlined_call_operand.vmem [shape: f32[1,512], index: 2, kind: input, shape index: {}]   ;;  %s4845_s3 = inlined_call_operand.hbm [shape: bf16[512,256], index: 3, kind: input, shape index: {}]   ;;  %s4846_s4 = inlined_call_operand.vmem [shape: f32[1,256], index: 4, kind: input, shape index: {}]   ;;  %s4847_s5 = inlined_call_operand.vmem [shape: bf16[256,128], index: 5, kind: input, shape index: {}]   ;;  %s4848_s6 = inlined_call_operand.vmem [shape: f32[1,128], index: 6, kind: input, shape index: {}]   ;;  %s4849_s7 = inlined_call_operand.vmem [shape: bf16[128,128], index: 7, kind: input, shape index: {}]   ;;  %s4850_s8 = inlined_call_operand.vmem [shape: f32[1,128], index: 8, kind: input, shape index: {}]   ;;  %s4851_s9 = inlined_call_operand.vmem [shape: f32[8,128], index: 9, kind: output, shape index: {}]  }
   0x1   :  { %s22_s11 = sshll.u32 %s4843_s1, 4  ;;  %s23_s11 = int_to_ptr.hbm [resolvable:$true] %s22_s11 }
   0x2   :  { %15 = vsyncpa [#allocation5], 0  ;;  %s4593_s12 = smov [#allocation2]   ;;  %s37_s16 = sshll.u32 %s4845_s3, 4  ;;  %s38_s16 = int_to_ptr.hbm [resolvable:$true] %s37_s16 }
   0x3   :  { %s24_s13 = sshll.u32 %s4593_s12, 4  ;;  %s4594_s17 = smov 256   ;;  %s25_s13 = int_to_ptr.vmem [resolvable:$true] %s24_s13 }
   0x4   :  { %s4595_s18 = smov 16   ;;  %s4596_s19 = smov [#allocation4]  }
   0x5   :  { %30 = dma.hbm_to_vmem [thread:$0]  %s23_s11, 32768, %s25_s13, [#allocation3], %s4594_s17, %s4594_s17, %s4595_s18  }
   0x6   :  { %s39_s20 = sshll.u32 %s4596_s19, 4  ;;  %s4597_s21 = smov 128   ;;  %s40_s20 = int_to_ptr.vmem [resolvable:$true] %s39_s20 }
   0x7   :  { %s4598_s22 = smov 8  }
   0x8   :  { %45 = dma.hbm_to_vmem [thread:$0]  %s38_s16, 8192, %s40_s20, [#allocation5], %s4597_s21, %s4597_s21, %s4598_s22  }
   0x9   :  { %4589 = dma.done.wait [#allocation3], 32768  }
   0xa   :  { %4590 = vsyncadd [#allocation3], 4294934528 }
   0xb   :  { %4591 = dma.done.wait [#allocation5], 8192  }
   0xc   :  { %4592 = vsyncadd [#allocation5], 4294959104  ;;  %v2926_v0 = vld [vmem:[#allocation2 + $0xe0] sm:$0xf]  ;;  %v4218_v1 = vld [vmem:[#allocation2 + $0xec] sm:$0xf0] }
   0xd   :  { %v3054_v2 = vld [vmem:[#allocation2 + $0x1e0] sm:$0xf]  ;;  %v2927_v3 = vor.u32 %v4218_v1, %v2926_v0  ;;  %v4250_v4 = vld [vmem:[#allocation2 + $0x1ec] sm:$0xf0] }
   0xe   :  { %v3182_v5 = vld [vmem:[#allocation2 + $0x2e0] sm:$0xf]  ;;  %v4282_v6 = vld [vmem:[#allocation2 + $0x2ec] sm:$0xf0]  ;;  %v3055_v7 = vor.u32 %v4250_v4, %v3054_v2 }
   0xf   :  { %v3183_v8 = vor.u32 %v4282_v6, %v3182_v5  ;;  %v3310_v9 = vld [vmem:[#allocation2 + $0x3e0] sm:$0xf]  ;;  %v4314_v10 = vld [vmem:[#allocation2 + $0x3ec] sm:$0xf0]  ;;  %1642 = vmatpush.bf16.msra.mxu0 %v2927_v3 }
  0x10   :  { %v2910_v11 = vld [vmem:[#allocation2 + $0xc0] sm:$0xf]  ;;  %v3311_v12 = vor.u32 %v4314_v10, %v3310_v9  ;;  %v4214_v13 = vld [vmem:[#allocation2 + $0xcc] sm:$0xf0]  ;;  %1655 = vmatpush.bf16.msra.mxu1 %v3055_v7 }
  0x11   :  { %v3038_v14 = vld [vmem:[#allocation2 + $0x1c0] sm:$0xf]  ;;  %v4246_v15 = vld [vmem:[#allocation2 + $0x1cc] sm:$0xf0]  ;;  %1668 = vmatpush.bf16.msra.mxu2 %v3183_v8  ;;  %v2911_v16 = vor.u32 %v4214_v13, %v2910_v11 }
  0x12   :  { %v3039_v17 = vor.u32 %v4246_v15, %v3038_v14  ;;  %v3166_v18 = vld [vmem:[#allocation2 + $0x2c0] sm:$0xf]  ;;  %v4278_v19 = vld [vmem:[#allocation2 + $0x2cc] sm:$0xf0]  ;;  %1681 = vmatpush.bf16.msra.mxu3 %v3311_v12 }
  0x13   :  { %v3294_v20 = vld [vmem:[#allocation2 + $0x3c0] sm:$0xf]  ;;  %v3167_v21 = vor.u32 %v4278_v19, %v3166_v18  ;;  %v4310_v22 = vld [vmem:[#allocation2 + $0x3cc] sm:$0xf0]  ;;  %1643 = vmatpush.bf16.msra.mxu0 %v2911_v16 }
  0x14   :  { %v2894_v23 = vld [vmem:[#allocation2 + $0xa0] sm:$0xf]  ;;  %v4210_v24 = vld [vmem:[#allocation2 + $0xac] sm:$0xf0]  ;;  %v3295_v25 = vor.u32 %v4310_v22, %v3294_v20  ;;  %1656 = vmatpush.bf16.msra.mxu1 %v3039_v17 }
  0x15   :  { %v3022_v26 = vld [vmem:[#allocation2 + $0x1a0] sm:$0xf]  ;;  %v4242_v27 = vld [vmem:[#allocation2 + $0x1ac] sm:$0xf0]  ;;  %v2895_v29 = vor.u32 %v4210_v24, %v2894_v23  ;;  %1669 = vmatpush.bf16.msra.mxu2 %v3167_v21 }
  0x16   :  { %v3150_v28 = vld [vmem:[#allocation2 + $0x2a0] sm:$0xf]  ;;  %v4274_v30 = vld [vmem:[#allocation2 + $0x2ac] sm:$0xf0]  ;;  %v3023_v33 = vor.u32 %v4242_v27, %v3022_v26  ;;  %1682 = vmatpush.bf16.msra.mxu3 %v3295_v25 }
  0x17   :  { %v3278_v31 = vld [vmem:[#allocation2 + $0x3a0] sm:$0xf]  ;;  %v4306_v32 = vld [vmem:[#allocation2 + $0x3ac] sm:$0xf0]  ;;  %v3151_v34 = vor.u32 %v4274_v30, %v3150_v28  ;;  %1644 = vmatpush.bf16.msra.mxu0 %v2895_v29 }
  0x18   :  { %v2878_v35 = vld [vmem:[#allocation2 + $0x80] sm:$0xf]  ;;  %v4206_v36 = vld [vmem:[#allocation2 + $0x8c] sm:$0xf0]  ;;  %v3279_v38 = vor.u32 %v4306_v32, %v3278_v31  ;;  %1657 = vmatpush.bf16.msra.mxu1 %v3023_v33 }
  0x19   :  { %v3006_v37 = vld [vmem:[#allocation2 + $0x180] sm:$0xf]  ;;  %v4238_v39 = vld [vmem:[#allocation2 + $0x18c] sm:$0xf0]  ;;  %v2879_v44 = vor.u32 %v4206_v36, %v2878_v35  ;;  %1670 = vmatpush.bf16.msra.mxu2 %v3151_v34 }
  0x1a   :  { %v3134_v40 = vld [vmem:[#allocation2 + $0x280] sm:$0xf]  ;;  %v4270_v41 = vld [vmem:[#allocation2 + $0x28c] sm:$0xf0]  ;;  %v3007_v45 = vor.u32 %v4238_v39, %v3006_v37  ;;  %1683 = vmatpush.bf16.msra.mxu3 %v3279_v38 }
  0x1b   :  { %v3262_v42 = vld [vmem:[#allocation2 + $0x380] sm:$0xf]  ;;  %v4302_v43 = vld [vmem:[#allocation2 + $0x38c] sm:$0xf0]  ;;  %v3135_v46 = vor.u32 %v4270_v41, %v3134_v40  ;;  %1645 = vmatpush.bf16.msra.mxu0 %v2879_v44 }
  0x1c   :  { %v2862_v47 = vld [vmem:[#allocation2 + $0x60] sm:$0xf]  ;;  %v4202_v48 = vld [vmem:[#allocation2 + $0x6c] sm:$0xf0]  ;;  %v3263_v50 = vor.u32 %v4302_v43, %v3262_v42  ;;  %1658 = vmatpush.bf16.msra.mxu1 %v3007_v45 }
  0x1d   :  { %v2990_v49 = vld [vmem:[#allocation2 + $0x160] sm:$0xf]  ;;  %v4234_v51 = vld [vmem:[#allocation2 + $0x16c] sm:$0xf0]  ;;  %v2863_v56 = vor.u32 %v4202_v48, %v2862_v47  ;;  %1671 = vmatpush.bf16.msra.mxu2 %v3135_v46 }
  0x1e   :  { %v3118_v52 = vld [vmem:[#allocation2 + $0x260] sm:$0xf]  ;;  %v4266_v53 = vld [vmem:[#allocation2 + $0x26c] sm:$0xf0]  ;;  %v2991_v57 = vor.u32 %v4234_v51, %v2990_v49  ;;  %1684 = vmatpush.bf16.msra.mxu3 %v3263_v50 }
  0x1f   :  { %v3246_v54 = vld [vmem:[#allocation2 + $0x360] sm:$0xf]  ;;  %v4298_v55 = vld [vmem:[#allocation2 + $0x36c] sm:$0xf0]  ;;  %v3119_v58 = vor.u32 %v4266_v53, %v3118_v52  ;;  %1646 = vmatpush.bf16.msra.mxu0 %v2863_v56 }
  0x20   :  { %v2846_v59 = vld [vmem:[#allocation2 + $0x40] sm:$0xf]  ;;  %v4198_v60 = vld [vmem:[#allocation2 + $0x4c] sm:$0xf0]  ;;  %v3247_v62 = vor.u32 %v4298_v55, %v3246_v54  ;;  %1659 = vmatpush.bf16.msra.mxu1 %v2991_v57 }
  0x21   :  { %v2974_v61 = vld [vmem:[#allocation2 + $0x140] sm:$0xf]  ;;  %v4230_v63 = vld [vmem:[#allocation2 + $0x14c] sm:$0xf0]  ;;  %v2847_v4 = vor.u32 %v4198_v60, %v2846_v59  ;;  %1672 = vmatpush.bf16.msra.mxu2 %v3119_v58 }
  0x22   :  { %v3102_v0 = vld [vmem:[#allocation2 + $0x240] sm:$0xf]  ;;  %v4262_v1 = vld [vmem:[#allocation2 + $0x24c] sm:$0xf0]  ;;  %v2975_v5 = vor.u32 %v4230_v63, %v2974_v61  ;;  %1685 = vmatpush.bf16.msra.mxu3 %v3247_v62 }
  0x23   :  { %v3230_v2 = vld [vmem:[#allocation2 + $0x340] sm:$0xf]  ;;  %v4294_v3 = vld [vmem:[#allocation2 + $0x34c] sm:$0xf0]  ;;  %v3103_v6 = vor.u32 %v4262_v1, %v3102_v0  ;;  %1647 = vmatpush.bf16.msra.mxu0 %v2847_v4 }
  0x24   :  { %v2830_v7 = vld [vmem:[#allocation2 + $0x20] sm:$0xf]  ;;  %v4194_v8 = vld [vmem:[#allocation2 + $0x2c] sm:$0xf0]  ;;  %v3231_v10 = vor.u32 %v4294_v3, %v3230_v2  ;;  %1660 = vmatpush.bf16.msra.mxu1 %v2975_v5  ;;  %v65_v2 = vld [vmem:[%s4842_s0 + $0x8] sm:$0xff] }
  0x25   :  { %v2958_v9 = vld [vmem:[#allocation2 + $0x120] sm:$0xf]  ;;  %v4226_v11 = vld [vmem:[#allocation2 + $0x12c] sm:$0xf0]  ;;  %v2831_v16 = vor.u32 %v4194_v8, %v2830_v7  ;;  %1673 = vmatpush.bf16.msra.mxu2 %v3103_v6  ;;  %v340_v8 = vunpack.c.l.b16 %v65_v2 }
  0x26   :  { %v3086_v12 = vld [vmem:[#allocation2 + $0x220] sm:$0xf]  ;;  %v4258_v13 = vld [vmem:[#allocation2 + $0x22c] sm:$0xf0]  ;;  %v2959_v19 = vor.u32 %v4226_v11, %v2958_v9  ;;  %1686 = vmatpush.bf16.msra.mxu3 %v3231_v10  ;;  %v341_v10 = vunpack.c.h.b16 %v65_v2 }
  0x27   :  { %v3214_v14 = vld [vmem:[#allocation2 + $0x320] sm:$0xf]  ;;  %v4290_v15 = vld [vmem:[#allocation2 + $0x32c] sm:$0xf0]  ;;  %v3087_v20 = vor.u32 %v4258_v13, %v3086_v12  ;;  %1648 = vmatpush.bf16.msra.mxu0 %v2831_v16 }
  0x28   :  { %v2814_v17 = vld [vmem:[#allocation2] sm:$0xf]  ;;  %v4190_v18 = vld [vmem:[#allocation2 + $0xc] sm:$0xf0]  ;;  %v3215_v24 = vor.u32 %v4290_v15, %v3214_v14  ;;  %1661 = vmatpush.bf16.msra.mxu1 %v2959_v19 }
  0x29   :  { %v2942_v21 = vld [vmem:[#allocation2 + $0x100] sm:$0xf]  ;;  %v4222_v22 = vld [vmem:[#allocation2 + $0x10c] sm:$0xf0]  ;;  %v2815_v31 = vor.u32 %v4190_v18, %v2814_v17  ;;  %1674 = vmatpush.bf16.msra.mxu2 %v3087_v20  ;;  %v4661_v18 = vpack.c.b16 %v340_v8, %v340_v8  ;;  %v4665_v20 = vpack.c.b16 %v341_v10, %v341_v10  ;;  %v4216_v8 = vld [vmem:[#allocation2 + $0xe4] sm:$0xf] }
  0x2a   :  { %v3070_v23 = vld [vmem:[#allocation2 + $0x200] sm:$0xf]  ;;  %v4254_v25 = vld [vmem:[#allocation2 + $0x20c] sm:$0xf0]  ;;  %v2943_v35 = vor.u32 %v4222_v22, %v2942_v21  ;;  %1687 = vmatpush.bf16.msra.mxu3 %v3215_v24  ;;  %v4248_v10 = vld [vmem:[#allocation2 + $0x1e4] sm:$0xf] }
  0x2b   :  { %v3198_v26 = vld [vmem:[#allocation2 + $0x300] sm:$0xf]  ;;  %v4286_v27 = vld [vmem:[#allocation2 + $0x30c] sm:$0xf0]  ;;  %v3071_v36 = vor.u32 %v4254_v25, %v3070_v23  ;;  %1649 = vmatpush.bf16.msra.mxu0 %v2815_v31 }
  0x2c   :  { %v3438_v28 = vld [vmem:[#allocation2 + $0x4e0] sm:$0xf]  ;;  %v4346_v29 = vld [vmem:[#allocation2 + $0x4ec] sm:$0xf0]  ;;  %v3199_v39 = vor.u32 %v4286_v27, %v3198_v26  ;;  %1662 = vmatpush.bf16.msra.mxu1 %v2943_v35 }
  0x2d   :  { %v3566_v30 = vld [vmem:[#allocation2 + $0x5e0] sm:$0xf]  ;;  %v4378_v32 = vld [vmem:[#allocation2 + $0x5ec] sm:$0xf0]  ;;  %v3439_v40 = vor.u32 %v4346_v29, %v3438_v28  ;;  %1675 = vmatpush.bf16.msra.mxu2 %v3071_v36 }
  0x2e   :  { %v3694_v33 = vld [vmem:[#allocation2 + $0x6e0] sm:$0xf]  ;;  %v4410_v34 = vld [vmem:[#allocation2 + $0x6ec] sm:$0xf0]  ;;  %v3567_v41 = vor.u32 %v4378_v32, %v3566_v30  ;;  %1688 = vmatpush.bf16.msra.mxu3 %v3199_v39 }
  0x2f   :  { %v3822_v37 = vld [vmem:[#allocation2 + $0x7e0] sm:$0xf]  ;;  %v4442_v38 = vld [vmem:[#allocation2 + $0x7ec] sm:$0xf0]  ;;  %v3695_v42 = vor.u32 %v4410_v34, %v3694_v33  ;;  %1694 = vmatpush.bf16.msrb.mxu0 %v3439_v40 }
  0x30   :  { %v3422_v43 = vld [vmem:[#allocation2 + $0x4c0] sm:$0xf]  ;;  %v4342_v44 = vld [vmem:[#allocation2 + $0x4cc] sm:$0xf0]  ;;  %v3823_v46 = vor.u32 %v4442_v38, %v3822_v37  ;;  %1707 = vmatpush.bf16.msrb.mxu1 %v3567_v41  ;;  %1676 = vmatmul.bf16.vlgmr.msra.gmra.mxu2 %v4661_v18 }
  0x31   :  { %v3550_v45 = vld [vmem:[#allocation2 + $0x5c0] sm:$0xf]  ;;  %v4374_v47 = vld [vmem:[#allocation2 + $0x5cc] sm:$0xf0]  ;;  %v3423_v52 = vor.u32 %v4342_v44, %v3422_v43  ;;  %1720 = vmatpush.bf16.msrb.mxu2 %v3695_v42  ;;  %1689 = vmatmul.bf16.vlgmr.msra.gmra.mxu3 %v4665_v20 }
  0x32   :  { %v3678_v48 = vld [vmem:[#allocation2 + $0x6c0] sm:$0xf]  ;;  %v4406_v49 = vld [vmem:[#allocation2 + $0x6cc] sm:$0xf0]  ;;  %v3551_v54 = vor.u32 %v4374_v47, %v3550_v45  ;;  %1733 = vmatpush.bf16.msrb.mxu3 %v3823_v46 }
  0x33   :  { %v3806_v50 = vld [vmem:[#allocation2 + $0x7c0] sm:$0xf]  ;;  %v4438_v51 = vld [vmem:[#allocation2 + $0x7cc] sm:$0xf0]  ;;  %v3679_v55 = vor.u32 %v4406_v49, %v3678_v48  ;;  %1695 = vmatpush.bf16.msrb.mxu0 %v3423_v52 }
  0x34   :  { %v3406_v53 = vld [vmem:[#allocation2 + $0x4a0] sm:$0xf]  ;;  %v4338_v56 = vld [vmem:[#allocation2 + $0x4ac] sm:$0xf0]  ;;  %v3807_v59 = vor.u32 %v4438_v51, %v3806_v50  ;;  %1708 = vmatpush.bf16.msrb.mxu1 %v3551_v54 }
  0x35   :  { %v3534_v57 = vld [vmem:[#allocation2 + $0x5a0] sm:$0xf]  ;;  %v4370_v58 = vld [vmem:[#allocation2 + $0x5ac] sm:$0xf0]  ;;  %v3407_v0 = vor.u32 %v4338_v56, %v3406_v53  ;;  %1721 = vmatpush.bf16.msrb.mxu2 %v3679_v55 }
  0x36   :  { %v3662_v60 = vld [vmem:[#allocation2 + $0x6a0] sm:$0xf]  ;;  %v4402_v61 = vld [vmem:[#allocation2 + $0x6ac] sm:$0xf0]  ;;  %v3535_v1 = vor.u32 %v4370_v58, %v3534_v57  ;;  %1734 = vmatpush.bf16.msrb.mxu3 %v3807_v59 }
  0x37   :  { %v3790_v62 = vld [vmem:[#allocation2 + $0x7a0] sm:$0xf]  ;;  %v4434_v63 = vld [vmem:[#allocation2 + $0x7ac] sm:$0xf0]  ;;  %v3663_v4 = vor.u32 %v4402_v61, %v3662_v60  ;;  %1696 = vmatpush.bf16.msrb.mxu0 %v3407_v0 }
  0x38   :  { %v64_v3 = vld [vmem:[%s4842_s0] sm:$0xff]  ;;  %v4334_v6 = vld [vmem:[#allocation2 + $0x48c] sm:$0xf0]  ;;  %v3791_v11 = vor.u32 %v4434_v63, %v3790_v62  ;;  %1709 = vmatpush.bf16.msrb.mxu1 %v3535_v1 }
  0x39   :  { %v3390_v5 = vld [vmem:[#allocation2 + $0x480] sm:$0xf]  ;;  %v338_v9 = vunpack.c.l.b16 %v64_v3  ;;  %v4366_v12 = vld [vmem:[#allocation2 + $0x58c] sm:$0xf0]  ;;  %v339_v15 = vunpack.c.h.b16 %v64_v3  ;;  %1722 = vmatpush.bf16.msrb.mxu2 %v3663_v4  ;;  %v67_v3 = vld [vmem:[%s4842_s0 + $0x18] sm:$0xff] }
  0x3a   :  { %v3518_v7 = vld [vmem:[#allocation2 + $0x580] sm:$0xf]  ;;  %v4398_v14 = vld [vmem:[#allocation2 + $0x68c] sm:$0xf0]  ;;  %v3391_v21 = vor.u32 %v4334_v6, %v3390_v5  ;;  %1735 = vmatpush.bf16.msrb.mxu3 %v3791_v11 }
  0x3b   :  { %v3646_v13 = vld [vmem:[#allocation2 + $0x680] sm:$0xf]  ;;  %v4430_v17 = vld [vmem:[#allocation2 + $0x78c] sm:$0xf0]  ;;  %v4663_v19 = vpack.c.b16 %v338_v9, %v338_v9  ;;  %v4667_v22 = vpack.c.b16 %v339_v15, %v339_v15  ;;  %v3519_v23 = vor.u32 %v4366_v12, %v3518_v7  ;;  %v2928_v9 = vld [vmem:[#allocation2 + $0xf0] sm:$0xf0]  ;;  %v344_v15 = vunpack.c.l.b16 %v67_v3 }
  0x3c   :  { %v3774_v16 = vld [vmem:[#allocation2 + $0x780] sm:$0xf]  ;;  %v3647_v24 = vor.u32 %v4398_v14, %v3646_v13  ;;  %v4330_v26 = vld [vmem:[#allocation2 + $0x46c] sm:$0xf0]  ;;  %1697 = vmatpush.bf16.msrb.mxu0 %v3391_v21  ;;  %v3056_v12 = vld [vmem:[#allocation2 + $0x1f0] sm:$0xf0] }
  0x3d   :  { %v3374_v25 = vld [vmem:[#allocation2 + $0x460] sm:$0xf]  ;;  %v3775_v28 = vor.u32 %v4430_v17, %v3774_v16  ;;  %v4362_v29 = vld [vmem:[#allocation2 + $0x56c] sm:$0xf0]  ;;  %1650 = vmatmul.bf16.vlgmr.msra.gmra.mxu0 %v4663_v19  ;;  %1663 = vmatmul.bf16.vlgmr.msra.gmra.mxu1 %v4667_v22  ;;  %v4280_v13 = vld [vmem:[#allocation2 + $0x2e4] sm:$0xf] }
  0x3e   :  { %v3502_v27 = vld [vmem:[#allocation2 + $0x560] sm:$0xf]  ;;  %v4394_v31 = vld [vmem:[#allocation2 + $0x66c] sm:$0xf0]  ;;  %v3375_v34 = vor.u32 %v4330_v26, %v3374_v25  ;;  %1710 = vmatpush.bf16.msrb.mxu1 %v3519_v23  ;;  %1723 = vmatpush.bf16.msrb.mxu2 %v3647_v24  ;;  %v3184_v14 = vld [vmem:[#allocation2 + $0x2f0] sm:$0xf0]  ;;  %v345_v25 = vunpack.c.h.b16 %v67_v3 }
  0x3f   :  { %v3630_v30 = vld [vmem:[#allocation2 + $0x660] sm:$0xf]  ;;  %v4426_v33 = vld [vmem:[#allocation2 + $0x76c] sm:$0xf0]  ;;  %v3503_v35 = vor.u32 %v4362_v29, %v3502_v27  ;;  %1736 = vmatpush.bf16.msrb.mxu3 %v3775_v28  ;;  %v4312_v21 = vld [vmem:[#allocation2 + $0x3e4] sm:$0xf]  ;;  %v2931_v27 = vor.u32 %v4216_v8, %v2928_v9  ;;  %v3059_v29 = vor.u32 %v4248_v10, %v3056_v12 }
  0x40   :  { %v3758_v32 = vld [vmem:[#allocation2 + $0x760] sm:$0xf]  ;;  %v3631_v36 = vor.u32 %v4394_v31, %v3630_v30  ;;  %v4326_v38 = vld [vmem:[#allocation2 + $0x44c] sm:$0xf0]  ;;  %1698 = vmatpush.bf16.msrb.mxu0 %v3375_v34  ;;  %v3312_v23 = vld [vmem:[#allocation2 + $0x3f0] sm:$0xf0]  ;;  %v3187_v30 = vor.u32 %v4280_v13, %v3184_v14 }
  0x41   :  { %v3358_v37 = vld [vmem:[#allocation2 + $0x440] sm:$0xf]  ;;  %v3759_v40 = vor.u32 %v4426_v33, %v3758_v32  ;;  %v4358_v41 = vld [vmem:[#allocation2 + $0x54c] sm:$0xf0]  ;;  %v4212_v31 = vld [vmem:[#allocation2 + $0xc4] sm:$0xf]  ;;  %v3315_v34 = vor.u32 %v4312_v21, %v3312_v23 }
  0x42   :  { %v3486_v39 = vld [vmem:[#allocation2 + $0x540] sm:$0xf]  ;;  %v4390_v43 = vld [vmem:[#allocation2 + $0x64c] sm:$0xf0]  ;;  %v3359_v46 = vor.u32 %v4326_v38, %v3358_v37  ;;  %1711 = vmatpush.bf16.msrb.mxu1 %v3503_v35  ;;  %1724 = vmatpush.bf16.msrb.mxu2 %v3631_v36  ;;  %v2912_v32 = vld [vmem:[#allocation2 + $0xd0] sm:$0xf0]  ;;  %v4679_v38 = vpack.c.b16 %v344_v15, %v344_v15 }
  0x43   :  { %v3614_v42 = vld [vmem:[#allocation2 + $0x640] sm:$0xf]  ;;  %v4422_v45 = vld [vmem:[#allocation2 + $0x74c] sm:$0xf0]  ;;  %v3487_v47 = vor.u32 %v4358_v41, %v3486_v39  ;;  %1737 = vmatpush.bf16.msrb.mxu3 %v3759_v40  ;;  %v4244_v33 = vld [vmem:[#allocation2 + $0x1c4] sm:$0xf] }
  0x44   :  { %v3742_v44 = vld [vmem:[#allocation2 + $0x740] sm:$0xf]  ;;  %v3615_v48 = vor.u32 %v4390_v43, %v3614_v42  ;;  %v4322_v50 = vld [vmem:[#allocation2 + $0x42c] sm:$0xf0]  ;;  %1699 = vmatpush.bf16.msrb.mxu0 %v3359_v46  ;;  %v3040_v35 = vld [vmem:[#allocation2 + $0x1d0] sm:$0xf0]  ;;  %v4683_v42 = vpack.c.b16 %v345_v25, %v345_v25  ;;  %v2915_v43 = vor.u32 %v4212_v31, %v2912_v32 }
  0x45   :  { %v3342_v49 = vld [vmem:[#allocation2 + $0x420] sm:$0xf]  ;;  %v3743_v52 = vor.u32 %v4422_v45, %v3742_v44  ;;  %v4354_v53 = vld [vmem:[#allocation2 + $0x52c] sm:$0xf0]  ;;  %v4276_v36 = vld [vmem:[#allocation2 + $0x2c4] sm:$0xf]  ;;  %v3043_v45 = vor.u32 %v4244_v33, %v3040_v35 }
  0x46   :  { %v3470_v51 = vld [vmem:[#allocation2 + $0x520] sm:$0xf]  ;;  %v4386_v55 = vld [vmem:[#allocation2 + $0x62c] sm:$0xf0]  ;;  %v3343_v59 = vor.u32 %v4322_v50, %v3342_v49  ;;  %1712 = vmatpush.bf16.msrb.mxu1 %v3487_v47  ;;  %1725 = vmatpush.bf16.msrb.mxu2 %v3615_v48  ;;  %v3168_v37 = vld [vmem:[#allocation2 + $0x2d0] sm:$0xf0] }
  0x47   :  { %v3598_v54 = vld [vmem:[#allocation2 + $0x620] sm:$0xf]  ;;  %v4418_v57 = vld [vmem:[#allocation2 + $0x72c] sm:$0xf0]  ;;  %v3471_v63 = vor.u32 %v4354_v53, %v3470_v51  ;;  %1738 = vmatpush.bf16.msrb.mxu3 %v3743_v52  ;;  %v4308_v39 = vld [vmem:[#allocation2 + $0x3c4] sm:$0xf]  ;;  %v3171_v46 = vor.u32 %v4276_v36, %v3168_v37 }
  0x48   :  { %v3726_v56 = vld [vmem:[#allocation2 + $0x720] sm:$0xf]  ;;  %v4318_v60 = vld [vmem:[#allocation2 + $0x40c] sm:$0xf0]  ;;  %v3599_v0 = vor.u32 %v4386_v55, %v3598_v54  ;;  %1700 = vmatpush.bf16.msrb.mxu0 %v3343_v59  ;;  %v3296_v40 = vld [vmem:[#allocation2 + $0x3d0] sm:$0xf0] }
  0x49   :  { %v3326_v58 = vld [vmem:[#allocation2 + $0x400] sm:$0xf]  ;;  %v4350_v62 = vld [vmem:[#allocation2 + $0x50c] sm:$0xf0]  ;;  %v3727_v4 = vor.u32 %v4418_v57, %v3726_v56  ;;  %v4208_v47 = vld [vmem:[#allocation2 + $0xa4] sm:$0xf]  ;;  %v3299_v50 = vor.u32 %v4308_v39, %v3296_v40 }
  0x4a   :  { %v3454_v61 = vld [vmem:[#allocation2 + $0x500] sm:$0xf]  ;;  %v4382_v2 = vld [vmem:[#allocation2 + $0x60c] sm:$0xf0]  ;;  %v3327_v11 = vor.u32 %v4318_v60, %v3326_v58  ;;  %1713 = vmatpush.bf16.msrb.mxu1 %v3471_v63  ;;  %1726 = vmatpush.bf16.msrb.mxu2 %v3599_v0  ;;  %v2896_v48 = vld [vmem:[#allocation2 + $0xb0] sm:$0xf0] }
  0x4b   :  { %v3582_v1 = vld [vmem:[#allocation2 + $0x600] sm:$0xf]  ;;  %v4414_v6 = vld [vmem:[#allocation2 + $0x70c] sm:$0xf0]  ;;  %v3455_v16 = vor.u32 %v4350_v62, %v3454_v61  ;;  %1739 = vmatpush.bf16.msrb.mxu3 %v3727_v4  ;;  %v4240_v49 = vld [vmem:[#allocation2 + $0x1a4] sm:$0xf]  ;;  %v2899_v56 = vor.u32 %v4208_v47, %v2896_v48 }
  0x4c   :  { %v3710_v5 = vld [vmem:[#allocation2 + $0x700] sm:$0xf]  ;;  %v66_v7 = vld [vmem:[%s4842_s0 + $0x10] sm:$0xff]  ;;  %v3583_v17 = vor.u32 %v4382_v2, %v3582_v1  ;;  %1701 = vmatpush.bf16.msrb.mxu0 %v3327_v11  ;;  %v4272_v52 = vld [vmem:[#allocation2 + $0x2a4] sm:$0xf] }
  0x4d   :  { %v342_v24 = vunpack.c.l.b16 %v66_v7  ;;  %v3711_v26 = vor.u32 %v4414_v6, %v3710_v5  ;;  %v343_v28 = vunpack.c.h.b16 %v66_v7  ;;  %v3024_v51 = vld [vmem:[#allocation2 + $0x1b0] sm:$0xf0]  ;;  %v4304_v54 = vld [vmem:[#allocation2 + $0x3a4] sm:$0xf] }
  0x4e   :  { %1714 = vmatpush.bf16.msrb.mxu1 %v3455_v16  ;;  %1727 = vmatpush.bf16.msrb.mxu2 %v3583_v17  ;;  %v3152_v53 = vld [vmem:[#allocation2 + $0x2b0] sm:$0xf0]  ;;  %v3027_v57 = vor.u32 %v4240_v49, %v3024_v51  ;;  %v4204_v59 = vld [vmem:[#allocation2 + $0x84] sm:$0xf] }
  0x4f   :  { %v4681_v41 = vpack.c.b16 %v342_v24, %v342_v24  ;;  %1740 = vmatpush.bf16.msrb.mxu3 %v3711_v26  ;;  %v4685_v44 = vpack.c.b16 %v343_v28, %v343_v28  ;;  %v3280_v55 = vld [vmem:[#allocation2 + $0x3b0] sm:$0xf0]  ;;  %v3155_v58 = vor.u32 %v4272_v52, %v3152_v53  ;;  %v4236_v61 = vld [vmem:[#allocation2 + $0x184] sm:$0xf] }
  0x50   :  { %1746 = vmatpush.bf16.msra.mxu0 %v2931_v27  ;;  %v2880_v60 = vld [vmem:[#allocation2 + $0x90] sm:$0xf0]  ;;  %v3283_v62 = vor.u32 %v4304_v54, %v3280_v55  ;;  %v4268_v0 = vld [vmem:[#allocation2 + $0x284] sm:$0xf] }
  0x51   :  { %1728 = vmatmul.bf16.vlgmr.msrb.gmra.mxu2 %v4679_v38  ;;  %1702 = vmatmul.bf16.vlgmr.msrb.gmra.mxu0 %v4681_v41  ;;  %v3008_v63 = vld [vmem:[#allocation2 + $0x190] sm:$0xf0]  ;;  %v4300_v2 = vld [vmem:[#allocation2 + $0x384] sm:$0xf]  ;;  %v2883_v4 = vor.u32 %v4204_v59, %v2880_v60 }
  0x52   :  { %1759 = vmatpush.bf16.msra.mxu1 %v3059_v29  ;;  %1772 = vmatpush.bf16.msra.mxu2 %v3187_v30  ;;  %v3136_v1 = vld [vmem:[#allocation2 + $0x290] sm:$0xf0]  ;;  %v3011_v5 = vor.u32 %v4236_v61, %v3008_v63  ;;  %v4200_v7 = vld [vmem:[#allocation2 + $0x64] sm:$0xf] }
  0x53   :  { %1785 = vmatpush.bf16.msra.mxu3 %v3315_v34  ;;  %1715 = vmatmul.bf16.vlgmr.msrb.gmra.mxu1 %v4685_v44  ;;  %v3264_v3 = vld [vmem:[#allocation2 + $0x390] sm:$0xf0]  ;;  %v3139_v6 = vor.u32 %v4268_v0, %v3136_v1  ;;  %v4232_v9 = vld [vmem:[#allocation2 + $0x164] sm:$0xf] }
  0x54   :  { %1741 = vmatmul.bf16.vlgmr.msrb.gmra.mxu3 %v4683_v42  ;;  %1747 = vmatpush.bf16.msra.mxu0 %v2915_v43  ;;  %v2864_v8 = vld [vmem:[#allocation2 + $0x70] sm:$0xf0]  ;;  %v3267_v10 = vor.u32 %v4300_v2, %v3264_v3  ;;  %v4264_v12 = vld [vmem:[#allocation2 + $0x264] sm:$0xf] }
  0x55   :  { %v2992_v11 = vld [vmem:[#allocation2 + $0x170] sm:$0xf0]  ;;  %v4296_v14 = vld [vmem:[#allocation2 + $0x364] sm:$0xf]  ;;  %v2867_v16 = vor.u32 %v4200_v7, %v2864_v8 }
  0x56   :  { %1760 = vmatpush.bf16.msra.mxu1 %v3043_v45  ;;  %1773 = vmatpush.bf16.msra.mxu2 %v3171_v46  ;;  %v3120_v13 = vld [vmem:[#allocation2 + $0x270] sm:$0xf0]  ;;  %v2995_v17 = vor.u32 %v4232_v9, %v2992_v11  ;;  %v4196_v23 = vld [vmem:[#allocation2 + $0x44] sm:$0xf] }
  0x57   :  { %1786 = vmatpush.bf16.msra.mxu3 %v3299_v50  ;;  %v3248_v15 = vld [vmem:[#allocation2 + $0x370] sm:$0xf0]  ;;  %v3123_v21 = vor.u32 %v4264_v12, %v3120_v13  ;;  %v4228_v25 = vld [vmem:[#allocation2 + $0x144] sm:$0xf] }
  0x58   :  { %1748 = vmatpush.bf16.msra.mxu0 %v2899_v56  ;;  %v2848_v24 = vld [vmem:[#allocation2 + $0x50] sm:$0xf0]  ;;  %v3251_v26 = vor.u32 %v4296_v14, %v3248_v15  ;;  %v4260_v28 = vld [vmem:[#allocation2 + $0x244] sm:$0xf] }
  0x59   :  { %v2976_v27 = vld [vmem:[#allocation2 + $0x150] sm:$0xf0]  ;;  %v4292_v30 = vld [vmem:[#allocation2 + $0x344] sm:$0xf]  ;;  %v2851_v32 = vor.u32 %v4196_v23, %v2848_v24 }
  0x5a   :  { %1761 = vmatpush.bf16.msra.mxu1 %v3027_v57  ;;  %1774 = vmatpush.bf16.msra.mxu2 %v3155_v58  ;;  %v3104_v29 = vld [vmem:[#allocation2 + $0x250] sm:$0xf0]  ;;  %v2979_v33 = vor.u32 %v4228_v25, %v2976_v27  ;;  %v4192_v35 = vld [vmem:[#allocation2 + $0x24] sm:$0xf] }
  0x5b   :  { %1787 = vmatpush.bf16.msra.mxu3 %v3283_v62  ;;  %v3232_v31 = vld [vmem:[#allocation2 + $0x350] sm:$0xf0]  ;;  %v3107_v34 = vor.u32 %v4260_v28, %v3104_v29  ;;  %v4224_v37 = vld [vmem:[#allocation2 + $0x124] sm:$0xf] }
  0x5c   :  { %1749 = vmatpush.bf16.msra.mxu0 %v2883_v4  ;;  %v2832_v36 = vld [vmem:[#allocation2 + $0x30] sm:$0xf0]  ;;  %v3235_v39 = vor.u32 %v4292_v30, %v3232_v31  ;;  %v4256_v43 = vld [vmem:[#allocation2 + $0x224] sm:$0xf] }
  0x5d   :  { %v2960_v40 = vld [vmem:[#allocation2 + $0x130] sm:$0xf0]  ;;  %v4288_v46 = vld [vmem:[#allocation2 + $0x324] sm:$0xf]  ;;  %v2835_v48 = vor.u32 %v4192_v35, %v2832_v36 }
  0x5e   :  { %1762 = vmatpush.bf16.msra.mxu1 %v3011_v5  ;;  %1775 = vmatpush.bf16.msra.mxu2 %v3139_v6  ;;  %v3088_v45 = vld [vmem:[#allocation2 + $0x230] sm:$0xf0]  ;;  %v4188_v49 = vld [vmem:[#allocation2 + $0x4] sm:$0xf]  ;;  %v2963_v51 = vor.u32 %v4224_v37, %v2960_v40 }
  0x5f   :  { %1788 = vmatpush.bf16.msra.mxu3 %v3267_v10  ;;  %v3216_v47 = vld [vmem:[#allocation2 + $0x330] sm:$0xf0]  ;;  %v3091_v52 = vor.u32 %v4256_v43, %v3088_v45  ;;  %v4220_v53 = vld [vmem:[#allocation2 + $0x104] sm:$0xf] }
  0x60   :  { %1750 = vmatpush.bf16.msra.mxu0 %v2867_v16  ;;  %v2816_v50 = vld [vmem:[#allocation2 + $0x10] sm:$0xf0]  ;;  %v4252_v55 = vld [vmem:[#allocation2 + $0x204] sm:$0xf]  ;;  %v3219_v56 = vor.u32 %v4288_v46, %v3216_v47 }
  0x61   :  { %v2944_v54 = vld [vmem:[#allocation2 + $0x110] sm:$0xf0]  ;;  %v4284_v58 = vld [vmem:[#allocation2 + $0x304] sm:$0xf]  ;;  %v2819_v63 = vor.u32 %v4188_v49, %v2816_v50 }
  0x62   :  { %1763 = vmatpush.bf16.msra.mxu1 %v2995_v17  ;;  %1776 = vmatpush.bf16.msra.mxu2 %v3123_v21  ;;  %v3072_v57 = vld [vmem:[#allocation2 + $0x210] sm:$0xf0]  ;;  %v4344_v60 = vld [vmem:[#allocation2 + $0x4e4] sm:$0xf]  ;;  %v2947_v3 = vor.u32 %v4220_v53, %v2944_v54 }
  0x63   :  { %1789 = vmatpush.bf16.msra.mxu3 %v3251_v26  ;;  %v3200_v59 = vld [vmem:[#allocation2 + $0x310] sm:$0xf0]  ;;  %v4376_v62 = vld [vmem:[#allocation2 + $0x5e4] sm:$0xf]  ;;  %v3075_v4 = vor.u32 %v4252_v55, %v3072_v57 }
  0x64   :  { %1751 = vmatpush.bf16.msra.mxu0 %v2851_v32  ;;  %v3440_v61 = vld [vmem:[#allocation2 + $0x4f0] sm:$0xf0]  ;;  %v4408_v1 = vld [vmem:[#allocation2 + $0x6e4] sm:$0xf]  ;;  %v3203_v7 = vor.u32 %v4284_v58, %v3200_v59 }
  0x65   :  { %v3568_v0 = vld [vmem:[#allocation2 + $0x5f0] sm:$0xf0]  ;;  %v4440_v5 = vld [vmem:[#allocation2 + $0x7e4] sm:$0xf]  ;;  %v3443_v8 = vor.u32 %v4344_v60, %v3440_v61 }
  0x66   :  { %1764 = vmatpush.bf16.msra.mxu1 %v2979_v33  ;;  %1777 = vmatpush.bf16.msra.mxu2 %v3107_v34  ;;  %v3696_v2 = vld [vmem:[#allocation2 + $0x6f0] sm:$0xf0]  ;;  %v3571_v9 = vor.u32 %v4376_v62, %v3568_v0  ;;  %v4340_v11 = vld [vmem:[#allocation2 + $0x4c4] sm:$0xf] }
  0x67   :  { %1790 = vmatpush.bf16.msra.mxu3 %v3235_v39  ;;  %v3824_v6 = vld [vmem:[#allocation2 + $0x7f0] sm:$0xf0]  ;;  %v3699_v10 = vor.u32 %v4408_v1, %v3696_v2  ;;  %v4372_v13 = vld [vmem:[#allocation2 + $0x5c4] sm:$0xf] }
  0x68   :  { %1752 = vmatpush.bf16.msra.mxu0 %v2835_v48  ;;  %v3424_v12 = vld [vmem:[#allocation2 + $0x4d0] sm:$0xf0]  ;;  %v3827_v14 = vor.u32 %v4440_v5, %v3824_v6  ;;  %v4404_v16 = vld [vmem:[#allocation2 + $0x6c4] sm:$0xf] }
  0x69   :  { %v3552_v15 = vld [vmem:[#allocation2 + $0x5d0] sm:$0xf0]  ;;  %v4436_v21 = vld [vmem:[#allocation2 + $0x7c4] sm:$0xf]  ;;  %v3427_v24 = vor.u32 %v4340_v11, %v3424_v12 }
  0x6a   :  { %1765 = vmatpush.bf16.msra.mxu1 %v2963_v51  ;;  %1778 = vmatpush.bf16.msra.mxu2 %v3091_v52  ;;  %v3680_v17 = vld [vmem:[#allocation2 + $0x6d0] sm:$0xf0]  ;;  %v3555_v25 = vor.u32 %v4372_v13, %v3552_v15  ;;  %v4336_v27 = vld [vmem:[#allocation2 + $0x4a4] sm:$0xf] }
  0x6b   :  { %1791 = vmatpush.bf16.msra.mxu3 %v3219_v56  ;;  %v3808_v23 = vld [vmem:[#allocation2 + $0x7d0] sm:$0xf0]  ;;  %v3683_v26 = vor.u32 %v4404_v16, %v3680_v17  ;;  %v4368_v29 = vld [vmem:[#allocation2 + $0x5a4] sm:$0xf] }
  0x6c   :  { %1753 = vmatpush.bf16.msra.mxu0 %v2819_v63  ;;  %v3408_v28 = vld [vmem:[#allocation2 + $0x4b0] sm:$0xf0]  ;;  %v3811_v30 = vor.u32 %v4436_v21, %v3808_v23  ;;  %v4400_v32 = vld [vmem:[#allocation2 + $0x6a4] sm:$0xf] }
  0x6d   :  { %v3536_v31 = vld [vmem:[#allocation2 + $0x5b0] sm:$0xf0]  ;;  %v4432_v34 = vld [vmem:[#allocation2 + $0x7a4] sm:$0xf]  ;;  %v3411_v36 = vor.u32 %v4336_v27, %v3408_v28 }
  0x6e   :  { %1766 = vmatpush.bf16.msra.mxu1 %v2947_v3  ;;  %1779 = vmatpush.bf16.msra.mxu2 %v3075_v4  ;;  %v3664_v33 = vld [vmem:[#allocation2 + $0x6b0] sm:$0xf0]  ;;  %v3539_v37 = vor.u32 %v4368_v29, %v3536_v31  ;;  %v4332_v40 = vld [vmem:[#allocation2 + $0x484] sm:$0xf] }
  0x6f   :  { %1792 = vmatpush.bf16.msra.mxu3 %v3203_v7  ;;  %v3792_v35 = vld [vmem:[#allocation2 + $0x7b0] sm:$0xf0]  ;;  %1754 = vmatmul.bf16.vlgmr.msra.gmra.mxu0 %v4663_v19  ;;  %v3667_v39 = vor.u32 %v4400_v32, %v3664_v33  ;;  %v4364_v45 = vld [vmem:[#allocation2 + $0x584] sm:$0xf] }
  0x70   :  { %1798 = vmatpush.bf16.msrb.mxu0 %v3443_v8  ;;  %v3392_v43 = vld [vmem:[#allocation2 + $0x490] sm:$0xf0]  ;;  %v3795_v46 = vor.u32 %v4432_v34, %v3792_v35  ;;  %v4396_v48 = vld [vmem:[#allocation2 + $0x684] sm:$0xf] }
  0x71   :  { %1780 = vmatmul.bf16.vlgmr.msra.gmra.mxu2 %v4661_v18  ;;  %1767 = vmatmul.bf16.vlgmr.msra.gmra.mxu1 %v4667_v22  ;;  %v3520_v47 = vld [vmem:[#allocation2 + $0x590] sm:$0xf0]  ;;  %v4428_v50 = vld [vmem:[#allocation2 + $0x784] sm:$0xf]  ;;  %v3395_v52 = vor.u32 %v4332_v40, %v3392_v43  ;;  %v2934_v43 = vld [vmem:[#allocation2 + $0xe8] sm:$0xf] }
  0x72   :  { %1811 = vmatpush.bf16.msrb.mxu1 %v3571_v9  ;;  %1824 = vmatpush.bf16.msrb.mxu2 %v3699_v10  ;;  %v3648_v49 = vld [vmem:[#allocation2 + $0x690] sm:$0xf0]  ;;  %v3523_v53 = vor.u32 %v4364_v45, %v3520_v47  ;;  %v4328_v55 = vld [vmem:[#allocation2 + $0x464] sm:$0xf]  ;;  %v4219_v45 = vld [vmem:[#allocation2 + $0xf4] sm:$0xf0] }
  0x73   :  { %1837 = vmatpush.bf16.msrb.mxu3 %v3827_v14  ;;  %v3776_v51 = vld [vmem:[#allocation2 + $0x790] sm:$0xf0]  ;;  %v3651_v54 = vor.u32 %v4396_v48, %v3648_v49  ;;  %v4360_v57 = vld [vmem:[#allocation2 + $0x564] sm:$0xf]  ;;  %v4251_v48 = vld [vmem:[#allocation2 + $0x1f4] sm:$0xf0] }
  0x74   :  { %1793 = vmatmul.bf16.vlgmr.msra.gmra.mxu3 %v4665_v20  ;;  %1799 = vmatpush.bf16.msrb.mxu0 %v3427_v24  ;;  %v3376_v56 = vld [vmem:[#allocation2 + $0x470] sm:$0xf0]  ;;  %v3779_v58 = vor.u32 %v4428_v50, %v3776_v51  ;;  %v4392_v60 = vld [vmem:[#allocation2 + $0x664] sm:$0xf]  ;;  %v3190_v49 = vld [vmem:[#allocation2 + $0x2e8] sm:$0xf] }
  0x75   :  { %v3504_v59 = vld [vmem:[#allocation2 + $0x570] sm:$0xf0]  ;;  %v4424_v62 = vld [vmem:[#allocation2 + $0x764] sm:$0xf]  ;;  %v3379_v0 = vor.u32 %v4328_v55, %v3376_v56  ;;  %v4283_v50 = vld [vmem:[#allocation2 + $0x2f4] sm:$0xf0]  ;;  %v2935_v56 = vor.u32 %v4219_v45, %v2934_v43 }
  0x76   :  { %1812 = vmatpush.bf16.msrb.mxu1 %v3555_v25  ;;  %1825 = vmatpush.bf16.msrb.mxu2 %v3683_v26  ;;  %v3632_v61 = vld [vmem:[#allocation2 + $0x670] sm:$0xf0]  ;;  %v3507_v1 = vor.u32 %v4360_v57, %v3504_v59  ;;  %v4324_v3 = vld [vmem:[#allocation2 + $0x444] sm:$0xf]  ;;  %v2918_v59 = vld [vmem:[#allocation2 + $0xc8] sm:$0xf] }
  0x77   :  { %1838 = vmatpush.bf16.msrb.mxu3 %v3811_v30  ;;  %v3760_v63 = vld [vmem:[#allocation2 + $0x770] sm:$0xf0]  ;;  %v3635_v2 = vor.u32 %v4392_v60, %v3632_v61  ;;  %v4356_v5 = vld [vmem:[#allocation2 + $0x544] sm:$0xf]  ;;  %v4215_v60 = vld [vmem:[#allocation2 + $0xd4] sm:$0xf0] }
  0x78   :  { %1800 = vmatpush.bf16.msrb.mxu0 %v3411_v36  ;;  %v3360_v4 = vld [vmem:[#allocation2 + $0x450] sm:$0xf0]  ;;  %v3763_v6 = vor.u32 %v4424_v62, %v3760_v63  ;;  %v4388_v8 = vld [vmem:[#allocation2 + $0x644] sm:$0xf]  ;;  %v3046_v61 = vld [vmem:[#allocation2 + $0x1c8] sm:$0xf] }
  0x79   :  { %v3488_v7 = vld [vmem:[#allocation2 + $0x550] sm:$0xf0]  ;;  %v4420_v10 = vld [vmem:[#allocation2 + $0x744] sm:$0xf]  ;;  %v3363_v12 = vor.u32 %v4324_v3, %v3360_v4  ;;  %v4247_v63 = vld [vmem:[#allocation2 + $0x1d4] sm:$0xf0]  ;;  %v2919_v4 = vor.u32 %v4215_v60, %v2918_v59 }
  0x7a   :  { %1813 = vmatpush.bf16.msrb.mxu1 %v3539_v37  ;;  %1826 = vmatpush.bf16.msrb.mxu2 %v3667_v39  ;;  %v3616_v9 = vld [vmem:[#allocation2 + $0x650] sm:$0xf0]  ;;  %v3491_v13 = vor.u32 %v4356_v5, %v3488_v7  ;;  %v4320_v15 = vld [vmem:[#allocation2 + $0x424] sm:$0xf]  ;;  %v4311_v3 = vld [vmem:[#allocation2 + $0x3d4] sm:$0xf0]  ;;  %v3047_v5 = vor.u32 %v4247_v63, %v3046_v61 }
  0x7b   :  { %1839 = vmatpush.bf16.msrb.mxu3 %v3795_v46  ;;  %v3744_v11 = vld [vmem:[#allocation2 + $0x750] sm:$0xf0]  ;;  %v3619_v14 = vor.u32 %v4388_v8, %v3616_v9  ;;  %v4352_v17 = vld [vmem:[#allocation2 + $0x524] sm:$0xf]  ;;  %v3062_v46 = vld [vmem:[#allocation2 + $0x1e8] sm:$0xf] }
  0x7c   :  { %1801 = vmatpush.bf16.msrb.mxu0 %v3395_v52  ;;  %v3344_v16 = vld [vmem:[#allocation2 + $0x430] sm:$0xf0]  ;;  %v3747_v21 = vor.u32 %v4420_v10, %v3744_v11  ;;  %v4384_v24 = vld [vmem:[#allocation2 + $0x624] sm:$0xf]  ;;  %v3063_v57 = vor.u32 %v4251_v48, %v3062_v46  ;;  %v2902_v7 = vld [vmem:[#allocation2 + $0xa8] sm:$0xf] }
  0x7d   :  { %v3472_v23 = vld [vmem:[#allocation2 + $0x530] sm:$0xf0]  ;;  %v4416_v26 = vld [vmem:[#allocation2 + $0x724] sm:$0xf]  ;;  %v3347_v28 = vor.u32 %v4320_v15, %v3344_v16  ;;  %v4211_v8 = vld [vmem:[#allocation2 + $0xb4] sm:$0xf0] }
  0x7e   :  { %1814 = vmatpush.bf16.msrb.mxu1 %v3523_v53  ;;  %1827 = vmatpush.bf16.msrb.mxu2 %v3651_v54  ;;  %v3600_v25 = vld [vmem:[#allocation2 + $0x630] sm:$0xf0]  ;;  %v4316_v29 = vld [vmem:[#allocation2 + $0x404] sm:$0xf]  ;;  %v3475_v31 = vor.u32 %v4352_v17, %v3472_v23  ;;  %v3318_v53 = vld [vmem:[#allocation2 + $0x3e8] sm:$0xf]  ;;  %v2903_v16 = vor.u32 %v4211_v8, %v2902_v7 }
  0x7f   :  { %1840 = vmatpush.bf16.msrb.mxu3 %v3779_v58  ;;  %v3728_v27 = vld [vmem:[#allocation2 + $0x730] sm:$0xf0]  ;;  %v3603_v32 = vor.u32 %v4384_v24, %v3600_v25  ;;  %v4348_v33 = vld [vmem:[#allocation2 + $0x504] sm:$0xf]  ;;  %v4315_v54 = vld [vmem:[#allocation2 + $0x3f4] sm:$0xf0]  ;;  %v3191_v58 = vor.u32 %v4283_v50, %v3190_v49 }
  0x80   :  { %1802 = vmatpush.bf16.msrb.mxu0 %v3379_v0  ;;  %v3328_v30 = vld [vmem:[#allocation2 + $0x410] sm:$0xf0]  ;;  %v4380_v35 = vld [vmem:[#allocation2 + $0x604] sm:$0xf]  ;;  %v3731_v36 = vor.u32 %v4416_v26, %v3728_v27  ;;  %v3319_v62 = vor.u32 %v4315_v54, %v3318_v53  ;;  %v3174_v0 = vld [vmem:[#allocation2 + $0x2c8] sm:$0xf] }
  0x81   :  { %v3456_v34 = vld [vmem:[#allocation2 + $0x510] sm:$0xf0]  ;;  %v4412_v39 = vld [vmem:[#allocation2 + $0x704] sm:$0xf]  ;;  %v3331_v47 = vor.u32 %v4316_v29, %v3328_v30  ;;  %v3030_v9 = vld [vmem:[#allocation2 + $0x1a8] sm:$0xf] }
  0x82   :  { %1815 = vmatpush.bf16.msrb.mxu1 %v3507_v1  ;;  %1828 = vmatpush.bf16.msrb.mxu2 %v3635_v2  ;;  %v3584_v37 = vld [vmem:[#allocation2 + $0x610] sm:$0xf0]  ;;  %v3459_v51 = vor.u32 %v4348_v33, %v3456_v34  ;;  %v4279_v1 = vld [vmem:[#allocation2 + $0x2d4] sm:$0xf0]  ;;  %v3302_v2 = vld [vmem:[#allocation2 + $0x3c8] sm:$0xf] }
  0x83   :  { %1841 = vmatpush.bf16.msrb.mxu3 %v3763_v6  ;;  %v3712_v40 = vld [vmem:[#allocation2 + $0x710] sm:$0xf0]  ;;  %v3587_v52 = vor.u32 %v4380_v35, %v3584_v37  ;;  %v3175_v6 = vor.u32 %v4279_v1, %v3174_v0  ;;  %v3303_v10 = vor.u32 %v4311_v3, %v3302_v2  ;;  %v4243_v11 = vld [vmem:[#allocation2 + $0x1b4] sm:$0xf0]  ;;  %v2886_v23 = vld [vmem:[#allocation2 + $0x88] sm:$0xf] }
  0x84   :  { %1803 = vmatpush.bf16.msrb.mxu0 %v3363_v12  ;;  %v3715_v55 = vor.u32 %v4412_v39, %v3712_v40  ;;  %v3158_v12 = vld [vmem:[#allocation2 + $0x2a8] sm:$0xf]  ;;  %v4307_v15 = vld [vmem:[#allocation2 + $0x3b4] sm:$0xf0]  ;;  %v3031_v17 = vor.u32 %v4243_v11, %v3030_v9 }
  0x85   :  { %v4207_v24 = vld [vmem:[#allocation2 + $0x94] sm:$0xf0]  ;;  %v3014_v25 = vld [vmem:[#allocation2 + $0x188] sm:$0xf] }
  0x86   :  { %1816 = vmatpush.bf16.msrb.mxu1 %v3491_v13  ;;  %1829 = vmatpush.bf16.msrb.mxu2 %v3619_v14  ;;  %v4275_v13 = vld [vmem:[#allocation2 + $0x2b4] sm:$0xf0]  ;;  %v3286_v14 = vld [vmem:[#allocation2 + $0x3a8] sm:$0xf] }
  0x87   :  { %1842 = vmatpush.bf16.msrb.mxu3 %v3747_v21  ;;  %v3159_v21 = vor.u32 %v4275_v13, %v3158_v12  ;;  %v3287_v26 = vor.u32 %v4307_v15, %v3286_v14  ;;  %v4239_v27 = vld [vmem:[#allocation2 + $0x194] sm:$0xf0]  ;;  %v3270_v30 = vld [vmem:[#allocation2 + $0x388] sm:$0xf] }
  0x88   :  { %1804 = vmatpush.bf16.msrb.mxu0 %v3347_v28  ;;  %v3142_v28 = vld [vmem:[#allocation2 + $0x288] sm:$0xf]  ;;  %v4271_v29 = vld [vmem:[#allocation2 + $0x294] sm:$0xf0]  ;;  %v3015_v33 = vor.u32 %v4239_v27, %v3014_v25 }
  0x89   :  { %v3143_v34 = vor.u32 %v4271_v29, %v3142_v28  ;;  %v2870_v35 = vld [vmem:[#allocation2 + $0x68] sm:$0xf]  ;;  %v4235_v40 = vld [vmem:[#allocation2 + $0x174] sm:$0xf0] }
  0x8a   :  { %1817 = vmatpush.bf16.msrb.mxu1 %v3475_v31  ;;  %1830 = vmatpush.bf16.msrb.mxu2 %v3603_v32  ;;  %v4303_v31 = vld [vmem:[#allocation2 + $0x394] sm:$0xf0]  ;;  %v2887_v32 = vor.u32 %v4207_v24, %v2886_v23  ;;  %v2998_v37 = vld [vmem:[#allocation2 + $0x168] sm:$0xf] }
  0x8b   :  { %1843 = vmatpush.bf16.msrb.mxu3 %v3731_v36  ;;  %v4203_v36 = vld [vmem:[#allocation2 + $0x74] sm:$0xf0]  ;;  %v3271_v39 = vor.u32 %v4303_v31, %v3270_v30  ;;  %v3126_v43 = vld [vmem:[#allocation2 + $0x268] sm:$0xf]  ;;  %v2999_v49 = vor.u32 %v4235_v40, %v2998_v37 }
  0x8c   :  { %1805 = vmatpush.bf16.msrb.mxu0 %v3331_v47  ;;  %v4267_v45 = vld [vmem:[#allocation2 + $0x274] sm:$0xf0]  ;;  %v3254_v46 = vld [vmem:[#allocation2 + $0x368] sm:$0xf]  ;;  %v2871_v48 = vor.u32 %v4203_v36, %v2870_v35 }
  0x8d   :  { %v4299_v47 = vld [vmem:[#allocation2 + $0x374] sm:$0xf0]  ;;  %v3127_v50 = vor.u32 %v4267_v45, %v3126_v43  ;;  %v2982_v53 = vld [vmem:[#allocation2 + $0x148] sm:$0xf] }
  0x8e   :  { %1818 = vmatpush.bf16.msrb.mxu1 %v3459_v51  ;;  %1831 = vmatpush.bf16.msrb.mxu2 %v3587_v52  ;;  %v2854_v51 = vld [vmem:[#allocation2 + $0x48] sm:$0xf]  ;;  %v4199_v52 = vld [vmem:[#allocation2 + $0x54] sm:$0xf0]  ;;  %v3255_v54 = vor.u32 %v4299_v47, %v3254_v46 }
  0x8f   :  { %1844 = vmatpush.bf16.msrb.mxu3 %v3715_v55  ;;  %1806 = vmatmul.bf16.vlgmr.msrb.gmra.mxu0 %v4681_v41  ;;  %v4231_v55 = vld [vmem:[#allocation2 + $0x154] sm:$0xf0]  ;;  %v2855_v60 = vor.u32 %v4199_v52, %v2854_v51  ;;  %v2838_v63 = vld [vmem:[#allocation2 + $0x28] sm:$0xf] }
  0x90   :  { %1850 = vmatpush.bf16.msra.mxu0 %v2935_v56  ;;  %v3110_v56 = vld [vmem:[#allocation2 + $0x248] sm:$0xf]  ;;  %v4295_v59 = vld [vmem:[#allocation2 + $0x354] sm:$0xf0]  ;;  %v2983_v61 = vor.u32 %v4231_v55, %v2982_v53 }
  0x91   :  { %1832 = vmatmul.bf16.vlgmr.msrb.gmra.mxu2 %v4679_v38  ;;  %1819 = vmatmul.bf16.vlgmr.msrb.gmra.mxu1 %v4685_v44  ;;  %v4195_v0 = vld [vmem:[#allocation2 + $0x34] sm:$0xf0]  ;;  %v2966_v1 = vld [vmem:[#allocation2 + $0x128] sm:$0xf] }
  0x92   :  { %1863 = vmatpush.bf16.msra.mxu1 %v3063_v57  ;;  %1876 = vmatpush.bf16.msra.mxu2 %v3191_v58  ;;  %v4263_v57 = vld [vmem:[#allocation2 + $0x254] sm:$0xf0]  ;;  %v3238_v58 = vld [vmem:[#allocation2 + $0x348] sm:$0xf]  ;;  %v2839_v8 = vor.u32 %v4195_v0, %v2838_v63 }
  0x93   :  { %1889 = vmatpush.bf16.msra.mxu3 %v3319_v62  ;;  %v3111_v62 = vor.u32 %v4263_v57, %v3110_v56  ;;  %v3239_v2 = vor.u32 %v4295_v59, %v3238_v58  ;;  %v4227_v3 = vld [vmem:[#allocation2 + $0x134] sm:$0xf0]  ;;  %v2822_v9 = vld [vmem:[#allocation2 + $0x8] sm:$0xf] }
  0x94   :  { %1845 = vmatmul.bf16.vlgmr.msrb.gmra.mxu3 %v4683_v42  ;;  %1851 = vmatpush.bf16.msra.mxu0 %v2919_v4  ;;  %v3094_v4 = vld [vmem:[#allocation2 + $0x228] sm:$0xf]  ;;  %v4291_v7 = vld [vmem:[#allocation2 + $0x334] sm:$0xf0]  ;;  %v2967_v11 = vor.u32 %v4227_v3, %v2966_v1 }
  0x95   :  { %v2950_v13 = vld [vmem:[#allocation2 + $0x108] sm:$0xf]  ;;  %v4223_v14 = vld [vmem:[#allocation2 + $0x114] sm:$0xf0] }
  0x96   :  { %1864 = vmatpush.bf16.msra.mxu1 %v3047_v5  ;;  %1877 = vmatpush.bf16.msra.mxu2 %v3175_v6  ;;  %v4259_v5 = vld [vmem:[#allocation2 + $0x234] sm:$0xf0]  ;;  %v3222_v6 = vld [vmem:[#allocation2 + $0x328] sm:$0xf]  ;;  %v2951_v31 = vor.u32 %v4223_v14, %v2950_v13 }
  0x97   :  { %1890 = vmatpush.bf16.msra.mxu3 %v3303_v10  ;;  %v4191_v10 = vld [vmem:[#allocation2 + $0x14] sm:$0xf0]  ;;  %v3095_v12 = vor.u32 %v4259_v5, %v3094_v4  ;;  %v3078_v15 = vld [vmem:[#allocation2 + $0x208] sm:$0xf] }
  0x98   :  { %1852 = vmatpush.bf16.msra.mxu0 %v2903_v16  ;;  %v3223_v16 = vor.u32 %v4291_v7, %v3222_v6  ;;  %v4287_v23 = vld [vmem:[#allocation2 + $0x314] sm:$0xf0]  ;;  %v3446_v24 = vld [vmem:[#allocation2 + $0x4e8] sm:$0xf]  ;;  %v2823_v27 = vor.u32 %v4191_v10, %v2822_v9 }
  0x99   :  { %v4347_v25 = vld [vmem:[#allocation2 + $0x4f4] sm:$0xf0]  ;;  %v3702_v29 = vld [vmem:[#allocation2 + $0x6e8] sm:$0xf] }
  0x9a   :  { %1865 = vmatpush.bf16.msra.mxu1 %v3031_v17  ;;  %1878 = vmatpush.bf16.msra.mxu2 %v3159_v21  ;;  %v4255_v17 = vld [vmem:[#allocation2 + $0x214] sm:$0xf0]  ;;  %v3206_v21 = vld [vmem:[#allocation2 + $0x308] sm:$0xf]  ;;  %v3447_v36 = vor.u32 %v4347_v25, %v3446_v24 }
  0x9b   :  { %1891 = vmatpush.bf16.msra.mxu3 %v3287_v26  ;;  %v3574_v26 = vld [vmem:[#allocation2 + $0x5e8] sm:$0xf]  ;;  %v4379_v28 = vld [vmem:[#allocation2 + $0x5f4] sm:$0xf0]  ;;  %v3207_v35 = vor.u32 %v4287_v23, %v3206_v21 }
  0x9c   :  { %1853 = vmatpush.bf16.msra.mxu0 %v2887_v32  ;;  %v4411_v30 = vld [vmem:[#allocation2 + $0x6f4] sm:$0xf0]  ;;  %v3079_v32 = vor.u32 %v4255_v17, %v3078_v15  ;;  %v3575_v37 = vor.u32 %v4379_v28, %v3574_v26  ;;  %v3430_v40 = vld [vmem:[#allocation2 + $0x4c8] sm:$0xf]  ;;  %v4706_v26 = vld [vmem:[%s4844_s2] sm:$0xf] }
  0x9d   :  { %v4343_v43 = vld [vmem:[#allocation2 + $0x4d4] sm:$0xf0]  ;;  %v3558_v45 = vld [vmem:[#allocation2 + $0x5c8] sm:$0xf] }
  0x9e   :  { %1866 = vmatpush.bf16.msra.mxu1 %v3015_v33  ;;  %1879 = vmatpush.bf16.msra.mxu2 %v3143_v34  ;;  %v3830_v33 = vld [vmem:[#allocation2 + $0x7e8] sm:$0xf]  ;;  %v4443_v34 = vld [vmem:[#allocation2 + $0x7f4] sm:$0xf0]  ;;  %v3431_v52 = vor.u32 %v4343_v43, %v3430_v40 }
  0x9f   :  { %1892 = vmatpush.bf16.msra.mxu3 %v3271_v39  ;;  %v3703_v39 = vor.u32 %v4411_v30, %v3702_v29  ;;  %v3831_v46 = vor.u32 %v4443_v34, %v3830_v33  ;;  %v4375_v47 = vld [vmem:[#allocation2 + $0x5d4] sm:$0xf0]  ;;  %v3414_v55 = vld [vmem:[#allocation2 + $0x4a8] sm:$0xf] }
  0xa0   :  { %1854 = vmatpush.bf16.msra.mxu0 %v2871_v48  ;;  %v3686_v48 = vld [vmem:[#allocation2 + $0x6c8] sm:$0xf]  ;;  %v4439_v51 = vld [vmem:[#allocation2 + $0x7d4] sm:$0xf0]  ;;  %v3559_v53 = vor.u32 %v4375_v47, %v3558_v45 }
  0xa1   :  { %v4339_v56 = vld [vmem:[#allocation2 + $0x4b4] sm:$0xf0]  ;;  %v3542_v57 = vld [vmem:[#allocation2 + $0x5a8] sm:$0xf] }
  0xa2   :  { %1867 = vmatpush.bf16.msra.mxu1 %v2999_v49  ;;  %1880 = vmatpush.bf16.msra.mxu2 %v3127_v50  ;;  %v4407_v49 = vld [vmem:[#allocation2 + $0x6d4] sm:$0xf0]  ;;  %v3814_v50 = vld [vmem:[#allocation2 + $0x7c8] sm:$0xf]  ;;  %v3415_v0 = vor.u32 %v4339_v56, %v3414_v55 }
  0xa3   :  { %1893 = vmatpush.bf16.msra.mxu3 %v3255_v54  ;;  %v3687_v54 = vor.u32 %v4407_v49, %v3686_v48  ;;  %v3815_v58 = vor.u32 %v4439_v51, %v3814_v50  ;;  %v4371_v59 = vld [vmem:[#allocation2 + $0x5b4] sm:$0xf0]  ;;  %v3398_v3 = vld [vmem:[#allocation2 + $0x488] sm:$0xf] }
  0xa4   :  { %1855 = vmatpush.bf16.msra.mxu0 %v2855_v60  ;;  %v3670_v60 = vld [vmem:[#allocation2 + $0x6a8] sm:$0xf]  ;;  %v4435_v63 = vld [vmem:[#allocation2 + $0x7b4] sm:$0xf0]  ;;  %v3543_v1 = vor.u32 %v4371_v59, %v3542_v57 }
  0xa5   :  { %v4335_v4 = vld [vmem:[#allocation2 + $0x494] sm:$0xf0]  ;;  %v3526_v5 = vld [vmem:[#allocation2 + $0x588] sm:$0xf] }
  0xa6   :  { %1868 = vmatpush.bf16.msra.mxu1 %v2983_v61  ;;  %1881 = vmatpush.bf16.msra.mxu2 %v3111_v62  ;;  %v4403_v61 = vld [vmem:[#allocation2 + $0x6b4] sm:$0xf0]  ;;  %v3798_v62 = vld [vmem:[#allocation2 + $0x7a8] sm:$0xf] }
  0xa7   :  { %1894 = vmatpush.bf16.msra.mxu3 %v3239_v2  ;;  %v3671_v2 = vor.u32 %v4403_v61, %v3670_v60  ;;  %v3799_v6 = vor.u32 %v4435_v63, %v3798_v62  ;;  %v4367_v7 = vld [vmem:[#allocation2 + $0x594] sm:$0xf0]  ;;  %v3782_v10 = vld [vmem:[#allocation2 + $0x788] sm:$0xf] }
  0xa8   :  { %1856 = vmatpush.bf16.msra.mxu0 %v2839_v8  ;;  %v3654_v8 = vld [vmem:[#allocation2 + $0x688] sm:$0xf]  ;;  %v4399_v9 = vld [vmem:[#allocation2 + $0x694] sm:$0xf0]  ;;  %v3527_v14 = vor.u32 %v4367_v7, %v3526_v5 }
  0xa9   :  { %v3382_v13 = vld [vmem:[#allocation2 + $0x468] sm:$0xf]  ;;  %v3655_v15 = vor.u32 %v4399_v9, %v3654_v8  ;;  %v4363_v21 = vld [vmem:[#allocation2 + $0x574] sm:$0xf0] }
  0xaa   :  { %1869 = vmatpush.bf16.msra.mxu1 %v2967_v11  ;;  %1882 = vmatpush.bf16.msra.mxu2 %v3095_v12  ;;  %v4431_v11 = vld [vmem:[#allocation2 + $0x794] sm:$0xf0]  ;;  %v3399_v12 = vor.u32 %v4335_v4, %v3398_v3  ;;  %v3510_v17 = vld [vmem:[#allocation2 + $0x568] sm:$0xf] }
  0xab   :  { %1895 = vmatpush.bf16.msra.mxu3 %v3223_v16  ;;  %v4331_v16 = vld [vmem:[#allocation2 + $0x474] sm:$0xf0]  ;;  %v3783_v23 = vor.u32 %v4431_v11, %v3782_v10  ;;  %v3638_v24 = vld [vmem:[#allocation2 + $0x668] sm:$0xf] }
  0xac   :  { %1857 = vmatpush.bf16.msra.mxu0 %v2823_v27  ;;  %v4395_v25 = vld [vmem:[#allocation2 + $0x674] sm:$0xf0]  ;;  %v3766_v27 = vld [vmem:[#allocation2 + $0x768] sm:$0xf]  ;;  %v3383_v29 = vor.u32 %v4331_v16, %v3382_v13  ;;  %v4217_v13 = vld [vmem:[#allocation2 + $0xec] sm:$0xf] }
  0xad   :  { %v4427_v28 = vld [vmem:[#allocation2 + $0x774] sm:$0xf0]  ;;  %v3366_v30 = vld [vmem:[#allocation2 + $0x448] sm:$0xf] }
  0xae   :  { %1870 = vmatpush.bf16.msra.mxu1 %v2951_v31  ;;  %1883 = vmatpush.bf16.msra.mxu2 %v3079_v32  ;;  %v3511_v31 = vor.u32 %v4363_v21, %v3510_v17  ;;  %v3639_v32 = vor.u32 %v4395_v25, %v3638_v24  ;;  %v4327_v33 = vld [vmem:[#allocation2 + $0x454] sm:$0xf0]  ;;  %v3494_v34 = vld [vmem:[#allocation2 + $0x548] sm:$0xf]  ;;  %v3064_v17 = vld [vmem:[#allocation2 + $0x1f8] sm:$0xf0] }
  0xaf   :  { %1896 = vmatpush.bf16.msra.mxu3 %v3207_v35  ;;  %1858 = vmatmul.bf16.vlgmr.msra.gmra.mxu0 %v4663_v19  ;;  %v326_v35 = vperm.slane %v4706_v26, 0  ;;  %v4391_v40 = vld [vmem:[#allocation2 + $0x654] sm:$0xf0]  ;;  %v3750_v43 = vld [vmem:[#allocation2 + $0x748] sm:$0xf] }
  0xb0   :  { %1902 = vmatpush.bf16.msrb.mxu0 %v3447_v36  ;;  %v3767_v36 = vor.u32 %v4427_v28, %v3766_v27  ;;  %v4423_v45 = vld [vmem:[#allocation2 + $0x754] sm:$0xf0]  ;;  %v3350_v50 = vld [vmem:[#allocation2 + $0x428] sm:$0xf]  ;;  %v4281_v21 = vld [vmem:[#allocation2 + $0x2ec] sm:$0xf] }
  0xb1   :  { %1884 = vmatmul.bf16.vlgmr.msra.gmra.mxu2 %v4661_v18  ;;  %1871 = vmatmul.bf16.vlgmr.msra.gmra.mxu1 %v4667_v22  ;;  %v4323_v51 = vld [vmem:[#allocation2 + $0x434] sm:$0xf0]  ;;  %v3751_v55 = vor.u32 %v4423_v45, %v3750_v43  ;;  %v3606_v57 = vld [vmem:[#allocation2 + $0x628] sm:$0xf]  ;;  %v3048_v43 = vld [vmem:[#allocation2 + $0x1d8] sm:$0xf0] }
  0xb2   :  { %1915 = vmatpush.bf16.msrb.mxu1 %v3575_v37  ;;  %1928 = vmatpush.bf16.msrb.mxu2 %v3703_v39  ;;  %v4359_v37 = vld [vmem:[#allocation2 + $0x554] sm:$0xf0]  ;;  %v3622_v39 = vld [vmem:[#allocation2 + $0x648] sm:$0xf]  ;;  %v3351_v62 = vor.u32 %v4323_v51, %v3350_v50  ;;  %v4277_v45 = vld [vmem:[#allocation2 + $0x2cc] sm:$0xf] }
  0xb3   :  { %1941 = vmatpush.bf16.msrb.mxu3 %v3831_v46  ;;  %v3367_v46 = vor.u32 %v4327_v33, %v3366_v30  ;;  %v3495_v48 = vor.u32 %v4359_v37, %v3494_v34  ;;  %v3623_v49 = vor.u32 %v4391_v40, %v3622_v39  ;;  %v4355_v56 = vld [vmem:[#allocation2 + $0x534] sm:$0xf0]  ;;  %v3734_v59 = vld [vmem:[#allocation2 + $0x728] sm:$0xf]  ;;  %v3320_v30 = vld [vmem:[#allocation2 + $0x3f8] sm:$0xf0] }
  0xb4   :  { %1897 = vmatmul.bf16.vlgmr.msra.gmra.mxu3 %v4665_v20  ;;  %1903 = vmatpush.bf16.msrb.mxu0 %v3431_v52  ;;  %v3478_v52 = vld [vmem:[#allocation2 + $0x528] sm:$0xf]  ;;  %v4419_v60 = vld [vmem:[#allocation2 + $0x734] sm:$0xf0]  ;;  %v2920_v37 = vld [vmem:[#allocation2 + $0xd8] sm:$0xf0] }
  0xb5   :  { %v3334_v63 = vld [vmem:[#allocation2 + $0x408] sm:$0xf]  ;;  %v4351_v4 = vld [vmem:[#allocation2 + $0x514] sm:$0xf0]  ;;  %v3735_v7 = vor.u32 %v4419_v60, %v3734_v59  ;;  %v4245_v39 = vld [vmem:[#allocation2 + $0x1cc] sm:$0xf] }
  0xb6   :  { %1916 = vmatpush.bf16.msrb.mxu1 %v3559_v53  ;;  %1929 = vmatpush.bf16.msrb.mxu2 %v3687_v54  ;;  %v3462_v3 = vld [vmem:[#allocation2 + $0x508] sm:$0xf]  ;;  %v4383_v8 = vld [vmem:[#allocation2 + $0x614] sm:$0xf0]  ;;  %v4273_v59 = vld [vmem:[#allocation2 + $0x2ac] sm:$0xf] }
  0xb7   :  { %1942 = vmatpush.bf16.msrb.mxu3 %v3815_v58  ;;  %v4387_v58 = vld [vmem:[#allocation2 + $0x634] sm:$0xf0]  ;;  %v3590_v5 = vld [vmem:[#allocation2 + $0x608] sm:$0xf]  ;;  %v3463_v27 = vor.u32 %v4351_v4, %v3462_v3  ;;  %v3160_v60 = vld [vmem:[#allocation2 + $0x2b8] sm:$0xf0] }
  0xb8   :  { %1904 = vmatpush.bf16.msrb.mxu0 %v3415_v0  ;;  %v4319_v0 = vld [vmem:[#allocation2 + $0x414] sm:$0xf0]  ;;  %v3718_v9 = vld [vmem:[#allocation2 + $0x708] sm:$0xf]  ;;  %v3591_v28 = vor.u32 %v4383_v8, %v3590_v5  ;;  %v2888_v3 = vld [vmem:[#allocation2 + $0x98] sm:$0xf0] }
  0xb9   :  { %v4415_v10 = vld [vmem:[#allocation2 + $0x714] sm:$0xf0]  ;;  %v3335_v16 = vor.u32 %v4319_v0, %v3334_v63  ;;  %v4237_v4 = vld [vmem:[#allocation2 + $0x18c] sm:$0xf]  ;;  %v3144_v8 = vld [vmem:[#allocation2 + $0x298] sm:$0xf0] }
  0xba   :  { %1917 = vmatpush.bf16.msrb.mxu1 %v3543_v1  ;;  %1930 = vmatpush.bf16.msrb.mxu2 %v3671_v2  ;;  %v1651_v47 = vpop.f32.mrf.mxu0  ;;  %v1664_v54 = vpop.f32.mrf.mxu1  ;;  %v3479_v1 = vor.u32 %v4355_v56, %v3478_v52  ;;  %v3607_v2 = vor.u32 %v4387_v58, %v3606_v57  ;;  %v3051_v52 = vor.u32 %v4245_v39, %v3048_v43  ;;  %v4241_v56 = vld [vmem:[#allocation2 + $0x1ac] sm:$0xf]  ;;  %v3032_v58 = vld [vmem:[#allocation2 + $0x1b8] sm:$0xf0] }
  0xbb   :  { %1943 = vmatpush.bf16.msrb.mxu3 %v3799_v6  ;;  %v1652_v53 = vadd.f32 %v1651_v47, %v326_v35  ;;  %v1677_v6 = vpop.f32.mrf.mxu2  ;;  %v4309_v47 = vld [vmem:[#allocation2 + $0x3cc] sm:$0xf]  ;;  %v3035_v0 = vor.u32 %v4241_v56, %v3032_v58  ;;  %v2984_v43 = vld [vmem:[#allocation2 + $0x158] sm:$0xf0] }
  0xbc   :  { %1905 = vmatpush.bf16.msrb.mxu0 %v3399_v12  ;;  %v1690_v12 = vpop.f32.mrf.mxu3  ;;  %v4229_v39 = vld [vmem:[#allocation2 + $0x14c] sm:$0xf] }
  0xbd   :  { %v1665_v61 = vadd.f32 %v1664_v54, %v1652_v53  ;;  %v4209_v54 = vld [vmem:[#allocation2 + $0xac] sm:$0xf] }
  0xbe   :  { %1918 = vmatpush.bf16.msrb.mxu1 %v3527_v14  ;;  %1931 = vmatpush.bf16.msrb.mxu2 %v3655_v15  ;;  %v2936_v14 = vld [vmem:[#allocation2 + $0xf8] sm:$0xf0]  ;;  %v4249_v15 = vld [vmem:[#allocation2 + $0x1ec] sm:$0xf] }
  0xbf   :  { %1944 = vmatpush.bf16.msrb.mxu3 %v3783_v23  ;;  %v1678_v11 = vadd.f32 %v1677_v6, %v1665_v61  ;;  %v3192_v23 = vld [vmem:[#allocation2 + $0x2f8] sm:$0xf0]  ;;  %v2939_v33 = vor.u32 %v4217_v13, %v2936_v14  ;;  %v3067_v34 = vor.u32 %v4249_v15, %v3064_v17  ;;  %v4305_v61 = vld [vmem:[#allocation2 + $0x3ac] sm:$0xf] }
  0xc0   :  { %1906 = vmatpush.bf16.msrb.mxu0 %v3383_v29  ;;  %v4313_v29 = vld [vmem:[#allocation2 + $0x3ec] sm:$0xf]  ;;  %v3195_v35 = vor.u32 %v4281_v21, %v3192_v23  ;;  %v3016_v6 = vld [vmem:[#allocation2 + $0x198] sm:$0xf0] }
  0xc1   :  { %v4709_v24 = vadd.f32 %v1690_v12, %v1678_v11  ;;  %v3323_v40 = vor.u32 %v4313_v29, %v3320_v30  ;;  %v3019_v13 = vor.u32 %v4237_v4, %v3016_v6  ;;  %v4201_v15 = vld [vmem:[#allocation2 + $0x6c] sm:$0xf]  ;;  %v3128_v29 = vld [vmem:[#allocation2 + $0x278] sm:$0xf0] }
  0xc2   :  { %1919 = vmatpush.bf16.msrb.mxu1 %v3511_v31  ;;  %1932 = vmatpush.bf16.msrb.mxu2 %v3639_v32  ;;  %v1653_v25 = vpop.f32.mrf.mxu0  ;;  %v1666_v31 = vpop.f32.mrf.mxu1  ;;  %v3719_v32 = vor.u32 %v4415_v10, %v3718_v9  ;;  %v4301_v9 = vld [vmem:[#allocation2 + $0x38c] sm:$0xf]  ;;  %v3272_v10 = vld [vmem:[#allocation2 + $0x398] sm:$0xf0] }
  0xc3   :  { %1945 = vmatpush.bf16.msrb.mxu3 %v3767_v36  ;;  %v4213_v36 = vld [vmem:[#allocation2 + $0xcc] sm:$0xf]  ;;  %v3275_v25 = vor.u32 %v4301_v9, %v3272_v10  ;;  %v3256_v31 = vld [vmem:[#allocation2 + $0x378] sm:$0xf0] }
  0xc4   :  { %1907 = vmatpush.bf16.msrb.mxu0 %v3367_v46  ;;  %v3176_v46 = vld [vmem:[#allocation2 + $0x2d8] sm:$0xf0]  ;;  %v2923_v50 = vor.u32 %v4213_v36, %v2920_v37  ;;  %v1692_v51 = vpop.f32.mrf.mxu3  ;;  %v4233_v17 = vld [vmem:[#allocation2 + $0x16c] sm:$0xf] }
  0xc5   :  { %v3179_v53 = vor.u32 %v4277_v45, %v3176_v46  ;;  %v4297_v30 = vld [vmem:[#allocation2 + $0x36c] sm:$0xf]  ;;  %v2856_v37 = vld [vmem:[#allocation2 + $0x58] sm:$0xf0] }
  0xc6   :  { %1920 = vmatpush.bf16.msrb.mxu1 %v3495_v48  ;;  %1933 = vmatpush.bf16.msrb.mxu2 %v3623_v49  ;;  %v3304_v48 = vld [vmem:[#allocation2 + $0x3d8] sm:$0xf0]  ;;  %v1679_v49 = vpop.f32.mrf.mxu2  ;;  %v4197_v36 = vld [vmem:[#allocation2 + $0x4c] sm:$0xf] }
  0xc7   :  { %1946 = vmatpush.bf16.msrb.mxu3 %v3751_v55  ;;  %v2904_v55 = vld [vmem:[#allocation2 + $0xb8] sm:$0xf0]  ;;  %v3307_v57 = vor.u32 %v4309_v47, %v3304_v48  ;;  %v4261_v45 = vld [vmem:[#allocation2 + $0x24c] sm:$0xf]  ;;  %v2859_v51 = vor.u32 %v4197_v36, %v2856_v37 }
  0xc8   :  { %1908 = vmatpush.bf16.msrb.mxu0 %v3351_v62  ;;  %v3288_v62 = vld [vmem:[#allocation2 + $0x3b8] sm:$0xf0]  ;;  %v2907_v63 = vor.u32 %v4209_v54, %v2904_v55  ;;  %v4293_v49 = vld [vmem:[#allocation2 + $0x34c] sm:$0xf]  ;;  %v2987_v54 = vor.u32 %v4229_v39, %v2984_v43 }
  0xc9   :  { %v3291_v5 = vor.u32 %v4305_v61, %v3288_v62  ;;  %v3112_v46 = vld [vmem:[#allocation2 + $0x258] sm:$0xf0]  ;;  %v4193_v56 = vld [vmem:[#allocation2 + $0x2c] sm:$0xf] }
  0xca   :  { %1921 = vmatpush.bf16.msrb.mxu1 %v3479_v1  ;;  %1934 = vmatpush.bf16.msrb.mxu2 %v3607_v2  ;;  %v3163_v1 = vor.u32 %v4273_v59, %v3160_v60  ;;  %v4205_v2 = vld [vmem:[#allocation2 + $0x8c] sm:$0xf]  ;;  %v3115_v55 = vor.u32 %v4261_v45, %v3112_v46  ;;  %v2968_v61 = vld [vmem:[#allocation2 + $0x138] sm:$0xf0] }
  0xcb   :  { %1947 = vmatpush.bf16.msrb.mxu3 %v3735_v7  ;;  %v4269_v7 = vld [vmem:[#allocation2 + $0x28c] sm:$0xf]  ;;  %v2891_v11 = vor.u32 %v4205_v2, %v2888_v3  ;;  %v2824_v4 = vld [vmem:[#allocation2 + $0x18] sm:$0xf0] }
  0xcc   :  { %1909 = vmatpush.bf16.msrb.mxu0 %v3335_v16  ;;  %v3147_v14 = vor.u32 %v4269_v7, %v3144_v8  ;;  %v2872_v16 = vld [vmem:[#allocation2 + $0x78] sm:$0xf0]  ;;  %v4225_v58 = vld [vmem:[#allocation2 + $0x12c] sm:$0xf] }
  0xcd   :  { %v4257_v62 = vld [vmem:[#allocation2 + $0x22c] sm:$0xf]  ;;  %v2952_v8 = vld [vmem:[#allocation2 + $0x118] sm:$0xf0] }
  0xce   :  { %1922 = vmatpush.bf16.msrb.mxu1 %v3463_v27  ;;  %1935 = vmatpush.bf16.msrb.mxu2 %v3591_v28  ;;  %v1703_v12 = vpop.f32.mrf.mxu0  ;;  %v3000_v27 = vld [vmem:[#allocation2 + $0x178] sm:$0xf0]  ;;  %v4265_v28 = vld [vmem:[#allocation2 + $0x26c] sm:$0xf] }
  0xcf   :  { %1948 = vmatpush.bf16.msrb.mxu3 %v3719_v32  ;;  %1910 = vmatmul.bf16.vlgmr.msrb.gmra.mxu0 %v4681_v41  ;;  %v1704_v21 = vadd.f32 %v1703_v12, %v4709_v24  ;;  %v3259_v24 = vor.u32 %v4297_v30, %v3256_v31  ;;  %v4189_v3 = vld [vmem:[#allocation2 + $0xc] sm:$0xf]  ;;  %v3080_v12 = vld [vmem:[#allocation2 + $0x218] sm:$0xf0] }
  0xd0   :  { %1954 = vmatpush.bf16.msra.mxu0 %v2939_v33  ;;  %v1716_v23 = vpop.f32.mrf.mxu1  ;;  %v2875_v33 = vor.u32 %v4201_v15, %v2872_v16  ;;  %v4221_v7 = vld [vmem:[#allocation2 + $0x10c] sm:$0xf]  ;;  %v3432_v39 = vld [vmem:[#allocation2 + $0x4d8] sm:$0xf0] }
  0xd1   :  { %1936 = vmatmul.bf16.vlgmr.msrb.gmra.mxu2 %v4679_v38  ;;  %1923 = vmatmul.bf16.vlgmr.msrb.gmra.mxu1 %v4685_v44  ;;  %v1717_v32 = vadd.f32 %v1716_v23, %v1704_v21  ;;  %v4253_v9 = vld [vmem:[#allocation2 + $0x20c] sm:$0xf]  ;;  %v2827_v23 = vor.u32 %v4189_v3, %v2824_v4  ;;  %v3560_v43 = vld [vmem:[#allocation2 + $0x5d8] sm:$0xf0] }
  0xd2   :  { %1967 = vmatpush.bf16.msra.mxu1 %v3067_v34  ;;  %1980 = vmatpush.bf16.msra.mxu2 %v3195_v35  ;;  %v3003_v34 = vor.u32 %v4233_v17, %v3000_v27  ;;  %v3131_v35 = vor.u32 %v4265_v28, %v3128_v29  ;;  %v4345_v16 = vld [vmem:[#allocation2 + $0x4ec] sm:$0xf]  ;;  %v3448_v17 = vld [vmem:[#allocation2 + $0x4f8] sm:$0xf0]  ;;  %v2955_v29 = vor.u32 %v4221_v7, %v2952_v8 }
  0xd3   :  { %1993 = vmatpush.bf16.msra.mxu3 %v3323_v40  ;;  %v4377_v21 = vld [vmem:[#allocation2 + $0x5ec] sm:$0xf]  ;;  %v3704_v28 = vld [vmem:[#allocation2 + $0x6f8] sm:$0xf0]  ;;  %v3083_v30 = vor.u32 %v4253_v9, %v3080_v12 }
  0xd4   :  { %1949 = vmatmul.bf16.vlgmr.msrb.gmra.mxu3 %v4683_v42  ;;  %1955 = vmatpush.bf16.msra.mxu0 %v2923_v50  ;;  %v1729_v40 = vpop.f32.mrf.mxu2  ;;  %v3240_v50 = vld [vmem:[#allocation2 + $0x358] sm:$0xf0]  ;;  %v4409_v27 = vld [vmem:[#allocation2 + $0x6ec] sm:$0xf] }
  0xd5   :  { %v1730_v47 = vadd.f32 %v1729_v40, %v1717_v32  ;;  %v3243_v60 = vor.u32 %v4293_v49, %v3240_v50  ;;  %v4441_v31 = vld [vmem:[#allocation2 + $0x7ec] sm:$0xf]  ;;  %v3832_v32 = vld [vmem:[#allocation2 + $0x7f8] sm:$0xf0]  ;;  %v3707_v36 = vor.u32 %v4409_v27, %v3704_v28 }
  0xd6   :  { %1968 = vmatpush.bf16.msra.mxu1 %v3051_v52  ;;  %1981 = vmatpush.bf16.msra.mxu2 %v3179_v53  ;;  %v1705_v53 = vpop.f32.mrf.mxu0  ;;  %v4341_v37 = vld [vmem:[#allocation2 + $0x4cc] sm:$0xf]  ;;  %v3688_v46 = vld [vmem:[#allocation2 + $0x6d8] sm:$0xf0] }
  0xd7   :  { %1994 = vmatpush.bf16.msra.mxu3 %v3307_v57  ;;  %v1742_v48 = vpop.f32.mrf.mxu3  ;;  %v2840_v57 = vld [vmem:[#allocation2 + $0x38] sm:$0xf0]  ;;  %v4373_v40 = vld [vmem:[#allocation2 + $0x5cc] sm:$0xf]  ;;  %v3435_v49 = vor.u32 %v4341_v37, %v3432_v39 }
  0xd8   :  { %1956 = vmatpush.bf16.msra.mxu0 %v2907_v63  ;;  %v4716_v52 = vadd.f32 %v1742_v48, %v1730_v47  ;;  %v1718_v59 = vpop.f32.mrf.mxu1  ;;  %v3096_v63 = vld [vmem:[#allocation2 + $0x238] sm:$0xf0]  ;;  %v2843_v2 = vor.u32 %v4193_v56, %v2840_v57  ;;  %v4405_v45 = vld [vmem:[#allocation2 + $0x6cc] sm:$0xf]  ;;  %v3563_v50 = vor.u32 %v4373_v40, %v3560_v43 }
  0xd9   :  { %v3099_v6 = vor.u32 %v4257_v62, %v3096_v63  ;;  %v4437_v47 = vld [vmem:[#allocation2 + $0x7cc] sm:$0xf]  ;;  %v3816_v48 = vld [vmem:[#allocation2 + $0x7d8] sm:$0xf0] }
  0xda   :  { %1969 = vmatpush.bf16.msra.mxu1 %v3035_v0  ;;  %1982 = vmatpush.bf16.msra.mxu2 %v3163_v1  ;;  %v4289_v0 = vld [vmem:[#allocation2 + $0x32c] sm:$0xf]  ;;  %v3224_v1 = vld [vmem:[#allocation2 + $0x338] sm:$0xf0]  ;;  %v3819_v56 = vor.u32 %v4437_v47, %v3816_v48 }
  0xdb   :  { %1995 = vmatpush.bf16.msra.mxu3 %v3291_v5  ;;  %v2971_v5 = vor.u32 %v4225_v58, %v2968_v61  ;;  %v4337_v53 = vld [vmem:[#allocation2 + $0x4ac] sm:$0xf]  ;;  %v3544_v57 = vld [vmem:[#allocation2 + $0x5b8] sm:$0xf0] }
  0xdc   :  { %1957 = vmatpush.bf16.msra.mxu0 %v2891_v11  ;;  %v1731_v10 = vpop.f32.mrf.mxu2  ;;  %v3227_v11 = vor.u32 %v4289_v0, %v3224_v1  ;;  %v4401_v58 = vld [vmem:[#allocation2 + $0x6ac] sm:$0xf]  ;;  %v3672_v59 = vld [vmem:[#allocation2 + $0x6b8] sm:$0xf0] }
  0xdd   :  { %v3800_v61 = vld [vmem:[#allocation2 + $0x7b8] sm:$0xf0]  ;;  %v3675_v0 = vor.u32 %v4401_v58, %v3672_v59  ;;  %v4333_v1 = vld [vmem:[#allocation2 + $0x48c] sm:$0xf]  ;;  %v327_v58 = vperm.slane %v4706_v26, 1 }
  0xde   :  { %1970 = vmatpush.bf16.msra.mxu1 %v3019_v13  ;;  %1983 = vmatpush.bf16.msra.mxu2 %v3147_v14  ;;  %v4285_v13 = vld [vmem:[#allocation2 + $0x30c] sm:$0xf]  ;;  %v3208_v14 = vld [vmem:[#allocation2 + $0x318] sm:$0xf0]  ;;  %v4459_v26 = vld [vmem:[#allocation4 + $0x74] sm:$0xf0] }
  0xdf   :  { %1996 = vmatpush.bf16.msra.mxu3 %v3275_v25  ;;  %v1744_v15 = vpop.f32.mrf.mxu3  ;;  %v3576_v25 = vld [vmem:[#allocation2 + $0x5f8] sm:$0xf0]  ;;  %v4429_v7 = vld [vmem:[#allocation2 + $0x78c] sm:$0xf] }
  0xe0   :  { %1958 = vmatpush.bf16.msra.mxu0 %v2875_v33  ;;  %v3211_v33 = vor.u32 %v4285_v13, %v3208_v14  ;;  %v3528_v4 = vld [vmem:[#allocation2 + $0x598] sm:$0xf0]  ;;  %v4329_v10 = vld [vmem:[#allocation2 + $0x46c] sm:$0xf] }
  0xe1   :  { %v4361_v12 = vld [vmem:[#allocation2 + $0x56c] sm:$0xf]  ;;  %v3512_v15 = vld [vmem:[#allocation2 + $0x578] sm:$0xf0] }
  0xe2   :  { %1971 = vmatpush.bf16.msra.mxu1 %v3003_v34  ;;  %1984 = vmatpush.bf16.msra.mxu2 %v3131_v35  ;;  %v3451_v34 = vor.u32 %v4345_v16, %v3448_v17  ;;  %v3579_v35 = vor.u32 %v4377_v21, %v3576_v25  ;;  %v4393_v16 = vld [vmem:[#allocation2 + $0x66c] sm:$0xf]  ;;  %v3640_v17 = vld [vmem:[#allocation2 + $0x678] sm:$0xf0]  ;;  %v3515_v27 = vor.u32 %v4361_v12, %v3512_v15 }
  0xe3   :  { %1997 = vmatpush.bf16.msra.mxu3 %v3259_v24  ;;  %v3835_v24 = vor.u32 %v4441_v31, %v3832_v32  ;;  %v4425_v21 = vld [vmem:[#allocation2 + $0x76c] sm:$0xf]  ;;  %v3643_v28 = vor.u32 %v4393_v16, %v3640_v17  ;;  %v3752_v40 = vld [vmem:[#allocation2 + $0x758] sm:$0xf0] }
  0xe4   :  { %1959 = vmatpush.bf16.msra.mxu0 %v2859_v51  ;;  %v3691_v51 = vor.u32 %v4405_v45, %v3688_v46  ;;  %v4357_v31 = vld [vmem:[#allocation2 + $0x54c] sm:$0xf]  ;;  %v3352_v48 = vld [vmem:[#allocation2 + $0x438] sm:$0xf0] }
  0xe5   :  { %v4421_v39 = vld [vmem:[#allocation2 + $0x74c] sm:$0xf] }
  0xe6   :  { %1972 = vmatpush.bf16.msra.mxu1 %v2987_v54  ;;  %1985 = vmatpush.bf16.msra.mxu2 %v3115_v55  ;;  %v3416_v54 = vld [vmem:[#allocation2 + $0x4b8] sm:$0xf0]  ;;  %v4369_v55 = vld [vmem:[#allocation2 + $0x5ac] sm:$0xf] }
  0xe7   :  { %1998 = vmatpush.bf16.msra.mxu3 %v3243_v60  ;;  %v4433_v60 = vld [vmem:[#allocation2 + $0x7ac] sm:$0xf]  ;;  %v3419_v62 = vor.u32 %v4337_v53, %v3416_v54  ;;  %v3547_v63 = vor.u32 %v4369_v55, %v3544_v57  ;;  %v3480_v53 = vld [vmem:[#allocation2 + $0x538] sm:$0xf0] }
  0xe8   :  { %1960 = vmatpush.bf16.msra.mxu0 %v2843_v2  ;;  %v3400_v2 = vld [vmem:[#allocation2 + $0x498] sm:$0xf0]  ;;  %v3803_v3 = vor.u32 %v4433_v60, %v3800_v61  ;;  %v4321_v47 = vld [vmem:[#allocation2 + $0x42c] sm:$0xf] }
  0xe9   :  { %v4385_v54 = vld [vmem:[#allocation2 + $0x62c] sm:$0xf]  ;;  %v3608_v55 = vld [vmem:[#allocation2 + $0x638] sm:$0xf0]  ;;  %v3355_v59 = vor.u32 %v4321_v47, %v3352_v48  ;;  %v3862_v47 = vld [vmem:[#allocation4 + $0x30] sm:$0xf] }
  0xea   :  { %1973 = vmatpush.bf16.msra.mxu1 %v2971_v5  ;;  %1986 = vmatpush.bf16.msra.mxu2 %v3099_v6  ;;  %v4397_v5 = vld [vmem:[#allocation2 + $0x68c] sm:$0xf]  ;;  %v3656_v6 = vld [vmem:[#allocation2 + $0x698] sm:$0xf0]  ;;  %v3926_v48 = vld [vmem:[#allocation4 + $0xb0] sm:$0xf] }
  0xeb   :  { %1999 = vmatpush.bf16.msra.mxu3 %v3227_v11  ;;  %v3659_v9 = vor.u32 %v4397_v5, %v3656_v6  ;;  %v3384_v11 = vld [vmem:[#allocation2 + $0x478] sm:$0xf0]  ;;  %v4317_v60 = vld [vmem:[#allocation2 + $0x40c] sm:$0xf] }
  0xec   :  { %1961 = vmatpush.bf16.msra.mxu0 %v2827_v23  ;;  %v4722_v8 = vpop.f32.mrf.mxu0  ;;  %v3768_v23 = vld [vmem:[#allocation2 + $0x778] sm:$0xf0]  ;;  %v3387_v25 = vor.u32 %v4329_v10, %v3384_v11  ;;  %v4413_v5 = vld [vmem:[#allocation2 + $0x70c] sm:$0xf]  ;;  %v4475_v10 = vld [vmem:[#allocation4 + $0xf4] sm:$0xf0] }
  0xed   :  { %v3736_v57 = vld [vmem:[#allocation2 + $0x738] sm:$0xf0] }
  0xee   :  { %1974 = vmatpush.bf16.msra.mxu1 %v2955_v29  ;;  %1987 = vmatpush.bf16.msra.mxu2 %v3083_v30  ;;  %v4724_v13 = vpop.f32.mrf.mxu1  ;;  %v4325_v29 = vld [vmem:[#allocation2 + $0x44c] sm:$0xf]  ;;  %v3368_v30 = vld [vmem:[#allocation2 + $0x458] sm:$0xf0] }
  0xef   :  { %2000 = vmatpush.bf16.msra.mxu3 %v3211_v33  ;;  %1962 = vmatmul.bf16.vlgmr.msra.gmra.mxu0 %v4663_v19  ;;  %v3784_v19 = vld [vmem:[#allocation2 + $0x798] sm:$0xf0]  ;;  %v3771_v33 = vor.u32 %v4425_v21, %v3768_v23  ;;  %v3886_v21 = vld [vmem:[#allocation4 + $0x60] sm:$0xf]  ;;  %v4457_v23 = vld [vmem:[#allocation4 + $0x64] sm:$0xf0] }
  0xf0   :  { %2006 = vmatpush.bf16.msrb.mxu0 %v3451_v34  ;;  %v3787_v14 = vor.u32 %v4429_v7, %v3784_v19  ;;  %v3496_v34 = vld [vmem:[#allocation2 + $0x558] sm:$0xf0]  ;;  %v3894_v19 = vld [vmem:[#allocation4 + $0x70] sm:$0xf] }
  0xf1   :  { %1988 = vmatmul.bf16.vlgmr.msra.gmra.mxu2 %v4661_v18  ;;  %1975 = vmatmul.bf16.vlgmr.msra.gmra.mxu1 %v4667_v22  ;;  %v4365_v18 = vld [vmem:[#allocation2 + $0x58c] sm:$0xf]  ;;  %v3499_v45 = vor.u32 %v4357_v31, %v3496_v34  ;;  %v3720_v7 = vld [vmem:[#allocation2 + $0x718] sm:$0xf0]  ;;  %v3895_v15 = vor.u32 %v4459_v26, %v3894_v19  ;;  %v4455_v31 = vld [vmem:[#allocation4 + $0x54] sm:$0xf0] }
  0xf2   :  { %2019 = vmatpush.bf16.msrb.mxu1 %v3579_v35  ;;  %2032 = vmatpush.bf16.msrb.mxu2 %v3707_v36  ;;  %v3531_v22 = vor.u32 %v4365_v18, %v3528_v4  ;;  %v4389_v35 = vld [vmem:[#allocation2 + $0x64c] sm:$0xf]  ;;  %v3624_v36 = vld [vmem:[#allocation2 + $0x658] sm:$0xf0]  ;;  %v3910_v19 = vld [vmem:[#allocation4 + $0x90] sm:$0xf] }
  0xf3   :  { %2045 = vmatpush.bf16.msrb.mxu3 %v3835_v24  ;;  %v3371_v24 = vor.u32 %v4325_v29, %v3368_v30  ;;  %v3627_v46 = vor.u32 %v4389_v35, %v3624_v36  ;;  %v3592_v4 = vld [vmem:[#allocation2 + $0x618] sm:$0xf0]  ;;  %v3878_v30 = vld [vmem:[#allocation4 + $0x50] sm:$0xf] }
  0xf4   :  { %2001 = vmatmul.bf16.vlgmr.msra.gmra.mxu3 %v4665_v20  ;;  %2007 = vmatpush.bf16.msrb.mxu0 %v3435_v49  ;;  %v3403_v20 = vor.u32 %v4333_v1, %v3400_v2  ;;  %v4726_v32 = vpop.f32.mrf.mxu2  ;;  %v1757_v43 = vpop.f32.mrf.mxu0  ;;  %v4353_v49 = vld [vmem:[#allocation2 + $0x52c] sm:$0xf]  ;;  %v3464_v1 = vld [vmem:[#allocation2 + $0x518] sm:$0xf0]  ;;  %v3879_v34 = vor.u32 %v4455_v31, %v3878_v30  ;;  %v4474_v30 = vld [vmem:[#allocation4 + $0xf4] sm:$0xf] }
  0xf5   :  { %v3483_v61 = vor.u32 %v4353_v49, %v3480_v53  ;;  %v4491_v43 = vld [vmem:[#allocation4 + $0x174] sm:$0xf0]  ;;  %v4489_v53 = vld [vmem:[#allocation4 + $0x164] sm:$0xf0]  ;;  %v3960_v31 = vld [vmem:[#allocation4 + $0xf8] sm:$0xf0] }
  0xf6   :  { %2020 = vmatpush.bf16.msrb.mxu1 %v3563_v50  ;;  %2033 = vmatpush.bf16.msrb.mxu2 %v3691_v51  ;;  %v1770_v50 = vpop.f32.mrf.mxu1  ;;  %v3755_v51 = vor.u32 %v4421_v39, %v3752_v40  ;;  %v4453_v39 = vld [vmem:[#allocation4 + $0x44] sm:$0xf0]  ;;  %v3934_v40 = vld [vmem:[#allocation4 + $0xc0] sm:$0xf] }
  0xf7   :  { %2046 = vmatpush.bf16.msrb.mxu3 %v3819_v56  ;;  %v4728_v37 = vpop.f32.mrf.mxu3  ;;  %v4417_v56 = vld [vmem:[#allocation2 + $0x72c] sm:$0xf] }
  0xf8   :  { %2008 = vmatpush.bf16.msrb.mxu0 %v3419_v62  ;;  %v3611_v62 = vor.u32 %v4385_v54, %v3608_v55  ;;  %v3739_v18 = vor.u32 %v4417_v56, %v3736_v57 }
  0xfa   :  { %2021 = vmatpush.bf16.msrb.mxu1 %v3547_v63  ;;  %2034 = vmatpush.bf16.msrb.mxu2 %v3675_v0  ;;  %v3336_v63 = vld [vmem:[#allocation2 + $0x418] sm:$0xf0]  ;;  %v4349_v0 = vld [vmem:[#allocation2 + $0x50c] sm:$0xf] }
  0xfb   :  { %2047 = vmatpush.bf16.msrb.mxu3 %v3803_v3  ;;  %v4381_v3 = vld [vmem:[#allocation2 + $0x60c] sm:$0xf]  ;;  %v3467_v11 = vor.u32 %v4349_v0, %v3464_v1  ;;  %v4006_v0 = vld [vmem:[#allocation4 + $0x150] sm:$0xf]  ;;  %v4487_v1 = vld [vmem:[#allocation4 + $0x154] sm:$0xf0] }
  0xfc   :  { %2009 = vmatpush.bf16.msrb.mxu0 %v3403_v20  ;;  %v1783_v2 = vpop.f32.mrf.mxu2  ;;  %v1756_v20 = vadd.f32 %v4722_v8, %v327_v58  ;;  %v3595_v12 = vor.u32 %v4381_v3, %v3592_v4  ;;  %v3887_v8 = vor.u32 %v4457_v23, %v3886_v21  ;;  %v3854_v58 = vld [vmem:[#allocation4 + $0x20] sm:$0xf]  ;;  %v4461_v21 = vld [vmem:[#allocation4 + $0x84] sm:$0xf0]  ;;  %v4458_v23 = vld [vmem:[#allocation4 + $0x74] sm:$0xf] }
  0xfd   :  { %v4007_v2 = vor.u32 %v4487_v1, %v4006_v0  ;;  %v4468_v0 = vld [vmem:[#allocation4 + $0xc4] sm:$0xf]  ;;  %v3936_v1 = vld [vmem:[#allocation4 + $0xc8] sm:$0xf0] }
  0xfe   :  { %2022 = vmatpush.bf16.msrb.mxu1 %v3531_v22  ;;  %2035 = vmatpush.bf16.msrb.mxu2 %v3659_v9  ;;  %v3339_v22 = vor.u32 %v4317_v60, %v3336_v63  ;;  %v3958_v9 = vld [vmem:[#allocation4 + $0xf0] sm:$0xf]  ;;  %v1769_v17 = vadd.f32 %v4724_v13, %v1756_v20  ;;  %v3918_v60 = vld [vmem:[#allocation4 + $0xa0] sm:$0xf]  ;;  %v4463_v20 = vld [vmem:[#allocation4 + $0x94] sm:$0xf0] }
  0xff   :  { %2048 = vmatpush.bf16.msrb.mxu3 %v3787_v14  ;;  %v1796_v6 = vpop.f32.mrf.mxu3  ;;  %v3723_v14 = vor.u32 %v4413_v5, %v3720_v7  ;;  %v3959_v16 = vor.u32 %v4475_v10, %v3958_v9  ;;  %v3942_v13 = vld [vmem:[#allocation4 + $0xd0] sm:$0xf]  ;;  %v4447_v7 = vld [vmem:[#allocation4 + $0x14] sm:$0xf0]  ;;  %v4485_v9 = vld [vmem:[#allocation4 + $0x144] sm:$0xf0] }
 0x100   :  { %2010 = vmatpush.bf16.msrb.mxu0 %v3387_v25  ;;  %v3950_v25 = vld [vmem:[#allocation4 + $0xe0] sm:$0xf]  ;;  %v1782_v29 = vadd.f32 %v4726_v32, %v1769_v17  ;;  %v4469_v32 = vld [vmem:[#allocation4 + $0xc4] sm:$0xf0]  ;;  %v3846_v6 = vld [vmem:[#allocation4 + $0x10] sm:$0xf] }
 0x101   :  { %v3902_v17 = vld [vmem:[#allocation4 + $0x80] sm:$0xf] }
 0x102   :  { %2023 = vmatpush.bf16.msrb.mxu1 %v3515_v27  ;;  %2036 = vmatpush.bf16.msrb.mxu2 %v3643_v28  ;;  %v4473_v27 = vld [vmem:[#allocation4 + $0xe4] sm:$0xf0]  ;;  %v1795_v35 = vadd.f32 %v4728_v37, %v1782_v29  ;;  %v4467_v37 = vld [vmem:[#allocation4 + $0xb4] sm:$0xf0] }
 0x103   :  { %2049 = vmatpush.bf16.msrb.mxu3 %v3771_v33  ;;  %v3951_v28 = vor.u32 %v4473_v27, %v3950_v25  ;;  %v4471_v33 = vld [vmem:[#allocation4 + $0xd4] sm:$0xf0]  ;;  %v3927_v57 = vor.u32 %v4467_v37, %v3926_v48  ;;  %v3896_v27 = vld [vmem:[#allocation4 + $0x78] sm:$0xf0] }
 0x104   :  { %2011 = vmatpush.bf16.msrb.mxu0 %v3371_v24  ;;  %v3943_v36 = vor.u32 %v4471_v33, %v3942_v13  ;;  %v4022_v24 = vld [vmem:[#allocation4 + $0x170] sm:$0xf]  ;;  %v4483_v29 = vld [vmem:[#allocation4 + $0x134] sm:$0xf0]  ;;  %v3880_v37 = vld [vmem:[#allocation4 + $0x58] sm:$0xf0] }
 0x105   :  { %v4479_v48 = vld [vmem:[#allocation4 + $0x114] sm:$0xf0] }
 0x106   :  { %2024 = vmatpush.bf16.msrb.mxu1 %v3499_v45  ;;  %2037 = vmatpush.bf16.msrb.mxu2 %v3627_v46  ;;  %v4023_v45 = vor.u32 %v4491_v43, %v4022_v24  ;;  %v3935_v46 = vor.u32 %v4469_v32, %v3934_v40  ;;  %v3963_v40 = vor.u32 %v4474_v30, %v3960_v31  ;;  %v3888_v32 = vld [vmem:[#allocation4 + $0x68] sm:$0xf0]  ;;  %v3982_v24 = vld [vmem:[#allocation4 + $0x120] sm:$0xf]  ;;  %v4481_v43 = vld [vmem:[#allocation4 + $0x124] sm:$0xf0] }
 0x107   :  { %2050 = vmatpush.bf16.msrb.mxu3 %v3755_v51  ;;  %v4014_v51 = vld [vmem:[#allocation4 + $0x160] sm:$0xf]  ;;  %v3848_v30 = vld [vmem:[#allocation4 + $0x18] sm:$0xf0]  ;;  %v4462_v31 = vld [vmem:[#allocation4 + $0x94] sm:$0xf] }
 0x108   :  { %2012 = vmatpush.bf16.msrb.mxu0 %v3355_v59  ;;  %v4015_v54 = vor.u32 %v4489_v53, %v4014_v51  ;;  %v4449_v59 = vld [vmem:[#allocation4 + $0x24] sm:$0xf0]  ;;  %v4470_v51 = vld [vmem:[#allocation4 + $0xd4] sm:$0xf] }
 0x10a   :  { %2025 = vmatpush.bf16.msrb.mxu1 %v3483_v61  ;;  %2038 = vmatpush.bf16.msrb.mxu2 %v3611_v62  ;;  %v4465_v62 = vld [vmem:[#allocation4 + $0xa4] sm:$0xf0] }
 0x10b   :  { %2051 = vmatpush.bf16.msrb.mxu3 %v3739_v18  ;;  %v3855_v18 = vor.u32 %v4449_v59, %v3854_v58  ;;  %v3919_v5 = vor.u32 %v4465_v62, %v3918_v60  ;;  %v4024_v58 = vld [vmem:[#allocation4 + $0x178] sm:$0xf0]  ;;  %v3872_v62 = vld [vmem:[#allocation4 + $0x48] sm:$0xf0] }
 0x10c   :  { %2013 = vmatpush.bf16.msrb.mxu0 %v3339_v22  ;;  %v3998_v22 = vld [vmem:[#allocation4 + $0x140] sm:$0xf] }
 0x10d   :  { %v3999_v10 = vor.u32 %v4485_v9, %v3998_v22  ;;  %v4016_v22 = vld [vmem:[#allocation4 + $0x168] sm:$0xf0] }
 0x10e   :  { %2026 = vmatpush.bf16.msrb.mxu1 %v3467_v11  ;;  %2039 = vmatpush.bf16.msrb.mxu2 %v3595_v12  ;;  %v1820_v50 = vpop.f32.mrf.mxu1  ;;  %v3847_v12 = vor.u32 %v4447_v7, %v3846_v6  ;;  %v4466_v6 = vld [vmem:[#allocation4 + $0xb4] sm:$0xf] }
 0x10f   :  { %2052 = vmatpush.bf16.msrb.mxu3 %v3723_v14  ;;  %2014 = vmatmul.bf16.vlgmr.msrb.gmra.mxu0 %v4681_v41  ;;  %v3870_v41 = vld [vmem:[#allocation4 + $0x40] sm:$0xf] }
 0x110   :  { %2456 = vmatpush.bf16.msra.mxu0 %v3895_v15  ;;  %v3838_v14 = vld [vmem:[#allocation4] sm:$0xf]  ;;  %v4445_v15 = vld [vmem:[#allocation4 + $0x4] sm:$0xf0] }
 0x111   :  { %2027 = vmatmul.bf16.vlgmr.msrb.gmra.mxu1 %v4685_v44  ;;  %2040 = vmatmul.bf16.vlgmr.msrb.gmra.mxu2 %v4679_v38  ;;  %v3871_v44 = vor.u32 %v4453_v39, %v3870_v41  ;;  %v1807_v38 = vpop.f32.mrf.mxu0  ;;  %v3899_v41 = vor.u32 %v4458_v23, %v3896_v27  ;;  %v4456_v39 = vld [vmem:[#allocation4 + $0x64] sm:$0xf]  ;;  %v4008_v23 = vld [vmem:[#allocation4 + $0x158] sm:$0xf0] }
 0x112   :  { %2469 = vmatpush.bf16.msra.mxu1 %v3959_v16  ;;  %2053 = vmatmul.bf16.vlgmr.msrb.gmra.mxu3 %v4683_v42  ;;  %v4451_v42 = vld [vmem:[#allocation4 + $0x34] sm:$0xf0]  ;;  %v1808_v49 = vadd.f32 %v1807_v38, %v1795_v35  ;;  %v3911_v16 = vor.u32 %v4463_v20, %v3910_v19  ;;  %v2058_v35 = vmax.f32 %v4716_v52, 0.0  ;;  %v3983_v38 = vor.u32 %v4481_v43, %v3982_v24  ;;  %v3928_v19 = vld [vmem:[#allocation4 + $0xb8] sm:$0xf0] }
 0x113   :  { %2482 = vmatpush.bf16.msra.mxu2 %v4023_v45  ;;  %v3863_v55 = vor.u32 %v4451_v42, %v3862_v47  ;;  %v4472_v45 = vld [vmem:[#allocation4 + $0xe4] sm:$0xf]  ;;  %v3891_v52 = vor.u32 %v4456_v39, %v3888_v32  ;;  %v3974_v42 = vld [vmem:[#allocation4 + $0x110] sm:$0xf] }
 0x114   :  { %2457 = vmatpush.bf16.msra.mxu0 %v3887_v8  ;;  %v1821_v56 = vadd.f32 %v1820_v50, %v1808_v49  ;;  %v1833_v61 = vpop.f32.mrf.mxu2  ;;  %v4742_v47 = vpack.c.bf16 %v2058_v35, %v2058_v35  ;;  %v4454_v50 = vld [vmem:[#allocation4 + $0x54] sm:$0xf]  ;;  %v3975_v53 = vor.u32 %v4479_v48, %v3974_v42  ;;  %v4488_v20 = vld [vmem:[#allocation4 + $0x164] sm:$0xf]  ;;  %v3904_v42 = vld [vmem:[#allocation4 + $0x88] sm:$0xf0] }
 0x115   :  { %v3883_v59 = vor.u32 %v4454_v50, %v3880_v37  ;;  %v4019_v9 = vor.u32 %v4488_v20, %v4016_v22  ;;  %v4484_v35 = vld [vmem:[#allocation4 + $0x144] sm:$0xf] }
 0x116   :  { %2470 = vmatpush.bf16.msra.mxu1 %v3951_v28  ;;  %v1834_v3 = vadd.f32 %v1833_v61, %v1821_v56  ;;  %v1822_v26 = vpop.f32.mrf.mxu1  ;;  %v3990_v28 = vld [vmem:[#allocation4 + $0x130] sm:$0xf]  ;;  %v4477_v56 = vld [vmem:[#allocation4 + $0x104] sm:$0xf0]  ;;  %v4452_v61 = vld [vmem:[#allocation4 + $0x44] sm:$0xf] }
 0x117   :  { %2483 = vmatpush.bf16.msra.mxu2 %v4015_v54  ;;  %v1846_v63 = vpop.f32.mrf.mxu3  ;;  %v3991_v13 = vor.u32 %v4483_v29, %v3990_v28  ;;  %v3944_v54 = vld [vmem:[#allocation4 + $0xd8] sm:$0xf0]  ;;  %v4446_v29 = vld [vmem:[#allocation4 + $0x14] sm:$0xf]  ;;  %v4444_v24 = vld [vmem:[#allocation4 + $0x4] sm:$0xf] }
 0x118   :  { %2458 = vmatpush.bf16.msra.mxu0 %v3879_v34  ;;  %v1847_v11 = vadd.f32 %v1846_v63, %v1834_v3  ;;  %v3839_v34 = vor.u32 %v4445_v15, %v3838_v14  ;;  %v3947_v60 = vor.u32 %v4470_v51, %v3944_v54  ;;  %v3939_v3 = vor.u32 %v4468_v0, %v3936_v1  ;;  %v3856_v14 = vld [vmem:[#allocation4 + $0x28] sm:$0xf0]  ;;  %v4464_v15 = vld [vmem:[#allocation4 + $0xa4] sm:$0xf] }
 0x119   :  { %v1809_v4 = vpop.f32.mrf.mxu0  ;;  %v3851_v39 = vor.u32 %v4446_v29, %v3848_v30  ;;  %v4480_v37 = vld [vmem:[#allocation4 + $0x124] sm:$0xf]  ;;  %v3984_v51 = vld [vmem:[#allocation4 + $0x128] sm:$0xf0]  ;;  %v4497_v29 = vld [vmem:[#allocation4 + $0x1a4] sm:$0xf0] }
 0x11a   :  { %2471 = vmatpush.bf16.msra.mxu1 %v3943_v36  ;;  %v2059_v33 = vmax.f32 %v1847_v11, 0.0  ;;  %v3903_v36 = vor.u32 %v4461_v21, %v3902_v17  ;;  %v4450_v4 = vld [vmem:[#allocation4 + $0x34] sm:$0xf]  ;;  %v3931_v11 = vor.u32 %v4466_v6, %v3928_v19  ;;  %v4476_v0 = vld [vmem:[#allocation4 + $0x104] sm:$0xf] }
 0x11b   :  { %2484 = vmatpush.bf16.msra.mxu2 %v4007_v2  ;;  %v4486_v21 = vld [vmem:[#allocation4 + $0x154] sm:$0xf]  ;;  %v3968_v1 = vld [vmem:[#allocation4 + $0x108] sm:$0xf0]  ;;  %v4503_v19 = vld [vmem:[#allocation4 + $0x1d4] sm:$0xf0] }
 0x11c   :  { %2459 = vmatpush.bf16.msra.mxu0 %v3871_v44  ;;  %v1835_v25 = vpop.f32.mrf.mxu2  ;;  %v3952_v44 = vld [vmem:[#allocation4 + $0xe8] sm:$0xf0]  ;;  %v4011_v27 = vor.u32 %v4486_v21, %v4008_v23 }
 0x11d   :  { %v3955_v49 = vor.u32 %v4472_v45, %v3952_v44  ;;  %v3840_v45 = vld [vmem:[#allocation4 + $0x8] sm:$0xf0]  ;;  %v4482_v44 = vld [vmem:[#allocation4 + $0x134] sm:$0xf] }
 0x11e   :  { %2472 = vmatpush.bf16.msra.mxu1 %v3935_v46  ;;  %v4740_v46 = vpack.c.bf16 %v2059_v33, %v2059_v33  ;;  %v3912_v33 = vld [vmem:[#allocation4 + $0x98] sm:$0xf0] }
 0x11f   :  { %2485 = vmatpush.bf16.msra.mxu2 %v3999_v10  ;;  %v1848_v8 = vpop.f32.mrf.mxu3  ;;  %v3915_v43 = vor.u32 %v4462_v31, %v3912_v33 }
 0x120   :  { %2460 = vmatpush.bf16.msra.mxu0 %v3863_v55  ;;  %v3966_v55 = vld [vmem:[#allocation4 + $0x100] sm:$0xf] }
 0x121   :  { %v3967_v63 = vor.u32 %v4477_v56, %v3966_v55  ;;  %v3843_v55 = vor.u32 %v4444_v24, %v3840_v45  ;;  %v4507_v56 = vld [vmem:[#allocation4 + $0x1f4] sm:$0xf0]  ;;  %v4506_v24 = vld [vmem:[#allocation4 + $0x1f4] sm:$0xf] }
 0x122   :  { %2473 = vmatpush.bf16.msra.mxu1 %v3927_v57  ;;  %v4490_v57 = vld [vmem:[#allocation4 + $0x174] sm:$0xf] }
 0x123   :  { %2486 = vmatpush.bf16.msra.mxu2 %v3991_v13  ;;  %v4027_v2 = vor.u32 %v4490_v57, %v4024_v58 }
 0x124   :  { %2461 = vmatpush.bf16.msra.mxu0 %v3855_v18  ;;  %v3875_v18 = vor.u32 %v4452_v61, %v3872_v62  ;;  %v3976_v61 = vld [vmem:[#allocation4 + $0x118] sm:$0xf0] }
 0x126   :  { %2474 = vmatpush.bf16.msra.mxu1 %v3919_v5  ;;  %v3864_v5 = vld [vmem:[#allocation4 + $0x38] sm:$0xf0] }
 0x127   :  { %2487 = vmatpush.bf16.msra.mxu2 %v3983_v38  ;;  %v3867_v10 = vor.u32 %v4450_v4, %v3864_v5  ;;  %v3992_v38 = vld [vmem:[#allocation4 + $0x138] sm:$0xf0]  ;;  %v4078_v4 = vld [vmem:[#allocation4 + $0x1e0] sm:$0xf]  ;;  %v4505_v5 = vld [vmem:[#allocation4 + $0x1e4] sm:$0xf0] }
 0x128   :  { %2462 = vmatpush.bf16.msra.mxu0 %v3847_v12  ;;  %v4448_v12 = vld [vmem:[#allocation4 + $0x24] sm:$0xf]  ;;  %v4079_v6 = vor.u32 %v4505_v5, %v4078_v4  ;;  %v4040_v4 = vld [vmem:[#allocation4 + $0x198] sm:$0xf0] }
 0x129   :  { %v3859_v8 = vor.u32 %v4448_v12, %v3856_v14 }
 0x12a   :  { %2475 = vmatpush.bf16.msra.mxu1 %v3911_v16  ;;  %v3920_v16 = vld [vmem:[#allocation4 + $0xa8] sm:$0xf0] }
 0x12b   :  { %2488 = vmatpush.bf16.msra.mxu2 %v3975_v53  ;;  %v3923_v28 = vor.u32 %v4464_v15, %v3920_v16  ;;  %v4086_v53 = vld [vmem:[#allocation4 + $0x1f0] sm:$0xf] }
 0x12c   :  { %2463 = vmatpush.bf16.msra.mxu0 %v3839_v34  ;;  %v1859_v7 = vpop.f32.mrf.mxu0  ;;  %v4087_v58 = vor.u32 %v4507_v56, %v4086_v53  ;;  %v4054_v16 = vld [vmem:[#allocation4 + $0x1b0] sm:$0xf] }
 0x12e   :  { %2476 = vmatpush.bf16.msra.mxu1 %v3903_v36  ;;  %v4746_v26 = vpop.f32.mrf.mxu1  ;;  %v4000_v36 = vld [vmem:[#allocation4 + $0x148] sm:$0xf0]  ;;  %2495 = vmatpush.bf16.msra.mxu3 %v4087_v58 }
 0x12f   :  { %2464 = vmatmul.bf16.vlgmr.msra.gmra.mxu0 %v4742_v47  ;;  %2489 = vmatpush.bf16.msra.mxu2 %v3967_v63 }
 0x130   :  { %2508 = vmatpush.bf16.msrb.mxu0 %v3899_v41  ;;  %v4003_v41 = vor.u32 %v4484_v35, %v4000_v36  ;;  %v4495_v35 = vld [vmem:[#allocation4 + $0x194] sm:$0xf0] }
 0x131   :  { %2477 = vmatmul.bf16.vlgmr.msra.gmra.mxu1 %v4740_v46 }
 0x132   :  { %2521 = vmatpush.bf16.msrb.mxu1 %v3963_v40  ;;  %v4751_v40 = vld [vmem:[%s4844_s2] sm:$0xf]  ;;  %2496 = vmatpush.bf16.msra.mxu3 %v4079_v6 }
 0x133   :  { %2534 = vmatpush.bf16.msrb.mxu2 %v4027_v2  ;;  %v328_v32 = vperm.slane %v4751_v40, 2 }
 0x134   :  { %2509 = vmatpush.bf16.msrb.mxu0 %v3891_v52  ;;  %v1885_v17 = vpop.f32.mrf.mxu2  ;;  %v1861_v13 = vpop.f32.mrf.mxu0  ;;  %v4460_v52 = vld [vmem:[#allocation4 + $0x84] sm:$0xf] }
 0x135   :  { %v1860_v54 = vadd.f32 %v1859_v7, %v328_v32  ;;  %v3907_v57 = vor.u32 %v4460_v52, %v3904_v42  ;;  %v4070_v7 = vld [vmem:[#allocation4 + $0x1d0] sm:$0xf] }
 0x136   :  { %2522 = vmatpush.bf16.msrb.mxu1 %v3955_v49  ;;  %v1874_v34 = vpop.f32.mrf.mxu1  ;;  %v3995_v49 = vor.u32 %v4482_v44, %v3992_v38  ;;  %v4504_v44 = vld [vmem:[#allocation4 + $0x1e4] sm:$0xf]  ;;  %v4080_v38 = vld [vmem:[#allocation4 + $0x1e8] sm:$0xf0] }
 0x137   :  { %2535 = vmatpush.bf16.msrb.mxu2 %v4019_v9  ;;  %v1898_v25 = vpop.f32.mrf.mxu3  ;;  %v1873_v62 = vadd.f32 %v4746_v26, %v1860_v54  ;;  %v4071_v9 = vor.u32 %v4503_v19, %v4070_v7  ;;  %v4038_v34 = vld [vmem:[#allocation4 + $0x190] sm:$0xf]  ;;  %v4083_v42 = vor.u32 %v4504_v44, %v4080_v38  ;;  %v4500_v54 = vld [vmem:[#allocation4 + $0x1c4] sm:$0xf]  ;;  %v4032_v19 = vld [vmem:[#allocation4 + $0x188] sm:$0xf0] }
 0x138   :  { %2510 = vmatpush.bf16.msrb.mxu0 %v3883_v59  ;;  %v3987_v59 = vor.u32 %v4480_v37, %v3984_v51  ;;  %v4039_v36 = vor.u32 %v4495_v35, %v4038_v34  ;;  %v4492_v7 = vld [vmem:[#allocation4 + $0x184] sm:$0xf]  ;;  %v4523_v44 = vld [vmem:[%s4847_s5 + $0x78] sm:$0xff]  ;;  %v4514_v38 = vld [vmem:[%s4847_s5 + $0x30] sm:$0xff] }
 0x139   :  { %v1886_v2 = vadd.f32 %v1885_v17, %v1873_v62  ;;  %2497 = vmatpush.bf16.msra.mxu3 %v4071_v9  ;;  %v4499_v17 = vld [vmem:[#allocation4 + $0x1b4] sm:$0xf0] }
 0x13a   :  { %2523 = vmatpush.bf16.msrb.mxu1 %v3947_v60  ;;  %v4478_v60 = vld [vmem:[#allocation4 + $0x114] sm:$0xf] }
 0x13b   :  { %2536 = vmatpush.bf16.msrb.mxu2 %v4011_v27  ;;  %v3979_v63 = vor.u32 %v4478_v60, %v3976_v61  ;;  %v4055_v27 = vor.u32 %v4499_v17, %v4054_v16  ;;  %v4056_v60 = vld [vmem:[#allocation4 + $0x1b8] sm:$0xf0]  ;;  %v329_v61 = vperm.slane %v4751_v40, 3 }
 0x13c   :  { %2511 = vmatpush.bf16.msrb.mxu0 %v3875_v18  ;;  %v1887_v48 = vpop.f32.mrf.mxu2  ;;  %v3971_v18 = vor.u32 %v4476_v0, %v3968_v1  ;;  %v4048_v0 = vld [vmem:[#allocation4 + $0x1a8] sm:$0xf0] }
 0x13e   :  { %2524 = vmatpush.bf16.msrb.mxu1 %v3939_v3  ;;  %v1899_v3 = vadd.f32 %v1898_v25, %v1886_v2 }
 0x13f   :  { %2537 = vmatpush.bf16.msrb.mxu2 %v4003_v41  ;;  %v1900_v50 = vpop.f32.mrf.mxu3  ;;  %v4030_v41 = vld [vmem:[#allocation4 + $0x180] sm:$0xf] }
 0x140   :  { %2512 = vmatpush.bf16.msrb.mxu0 %v3867_v10  ;;  %v4062_v10 = vld [vmem:[#allocation4 + $0x1c0] sm:$0xf]  ;;  %v4072_v50 = vld [vmem:[#allocation4 + $0x1d8] sm:$0xf0] }
 0x142   :  { %2525 = vmatpush.bf16.msrb.mxu1 %v3931_v11  ;;  %v4501_v11 = vld [vmem:[#allocation4 + $0x1c4] sm:$0xf0] }
 0x143   :  { %2538 = vmatpush.bf16.msrb.mxu2 %v3995_v49  ;;  %v4502_v49 = vld [vmem:[#allocation4 + $0x1d4] sm:$0xf] }
 0x144   :  { %2513 = vmatpush.bf16.msrb.mxu0 %v3859_v8  ;;  %v4075_v37 = vor.u32 %v4502_v49, %v4072_v50  ;;  %v4512_v49 = vld [vmem:[%s4847_s5 + $0x20] sm:$0xff]  ;;  %v4511_v50 = vld [vmem:[%s4847_s5 + $0x18] sm:$0xff] }
 0x146   :  { %2526 = vmatpush.bf16.msrb.mxu1 %v3923_v28  ;;  %v4046_v28 = vld [vmem:[#allocation4 + $0x1a0] sm:$0xf] }
 0x147   :  { %2539 = vmatpush.bf16.msrb.mxu2 %v3987_v59  ;;  %v4047_v13 = vor.u32 %v4497_v29, %v4046_v28  ;;  %v4498_v59 = vld [vmem:[#allocation4 + $0x1b4] sm:$0xf] }
 0x148   :  { %2514 = vmatpush.bf16.msrb.mxu0 %v3851_v39  ;;  %v4493_v39 = vld [vmem:[#allocation4 + $0x184] sm:$0xf0]  ;;  %v4059_v62 = vor.u32 %v4498_v59, %v4056_v60  ;;  %v4519_v59 = vld [vmem:[%s4847_s5 + $0x58] sm:$0xff]  ;;  %v4518_v60 = vld [vmem:[%s4847_s5 + $0x50] sm:$0xff] }
 0x149   :  { %v4031_v32 = vor.u32 %v4493_v39, %v4030_v41 }
 0x14a   :  { %2527 = vmatpush.bf16.msrb.mxu1 %v3915_v43  ;;  %v4088_v43 = vld [vmem:[#allocation4 + $0x1f8] sm:$0xf0] }
 0x14b   :  { %2540 = vmatpush.bf16.msrb.mxu2 %v3979_v63  ;;  %v4091_v45 = vor.u32 %v4506_v24, %v4088_v43  ;;  %v4496_v63 = vld [vmem:[#allocation4 + $0x1a4] sm:$0xf] }
 0x14c   :  { %2515 = vmatpush.bf16.msrb.mxu0 %v3843_v55  ;;  %v1911_v26 = vpop.f32.mrf.mxu0  ;;  %v4064_v55 = vld [vmem:[#allocation4 + $0x1c8] sm:$0xf0] }
 0x14d   :  { %v1912_v20 = vadd.f32 %v1911_v26, %v1899_v3  ;;  %v4494_v3 = vld [vmem:[#allocation4 + $0x194] sm:$0xf] }
 0x14e   :  { %2528 = vmatpush.bf16.msrb.mxu1 %v3907_v57  ;;  %v1924_v22 = vpop.f32.mrf.mxu1  ;;  %v4067_v57 = vor.u32 %v4500_v54, %v4064_v55  ;;  %v4043_v6 = vor.u32 %v4494_v3, %v4040_v4  ;;  %v4509_v55 = vld [vmem:[%s4847_s5 + $0x8] sm:$0xff] }
 0x14f   :  { %2516 = vmatmul.bf16.vlgmr.msrb.gmra.mxu0 %v4742_v47  ;;  %2541 = vmatpush.bf16.msrb.mxu2 %v3971_v18  ;;  %v1925_v47 = vadd.f32 %v1924_v22, %v1912_v20  ;;  %v4051_v18 = vor.u32 %v4496_v63, %v4048_v0  ;;  %v4035_v20 = vor.u32 %v4492_v7, %v4032_v19  ;;  %v4531_v63 = vld [vmem:[%s4849_s7 + $0x38] sm:$0xff]  ;;  %v4530_v0 = vld [vmem:[%s4849_s7 + $0x30] sm:$0xff] }
 0x151   :  { %2529 = vmatmul.bf16.vlgmr.msrb.gmra.mxu1 %v4740_v46  ;;  %v4063_v46 = vor.u32 %v4501_v11, %v4062_v10 }
 0x152   :  { %2709 = vmatpush.bf16.msra.mxu1 %v4523_v44 }
 0x153   :  { %2498 = vmatpush.bf16.msra.mxu3 %v4063_v46 }
 0x154   :  { %v1937_v12 = vpop.f32.mrf.mxu2  ;;  %v1913_v23 = vpop.f32.mrf.mxu0 }
 0x155   :  { %v1938_v14 = vadd.f32 %v1937_v12, %v1925_v47 }
 0x156   :  { %v1926_v25 = vpop.f32.mrf.mxu1 }
 0x157   :  { %v1950_v15 = vpop.f32.mrf.mxu3  ;;  %2499 = vmatpush.bf16.msra.mxu3 %v4055_v27 }
 0x158   :  { %v1951_v21 = vadd.f32 %v1950_v15, %v1938_v14 }
 0x15a   :  { %v2060_v8 = vmax.f32 %v1951_v21, 0.0 }
 0x15b   :  { %2500 = vmatpush.bf16.msra.mxu3 %v4047_v13 }
 0x15c   :  { %v2064_v30 = vpack.c.bf16 %v2060_v8, %v2060_v8  ;;  %v1939_v31 = vpop.f32.mrf.mxu2  ;;  %v2130_v8 = vld [vmem:[%s4846_s4] sm:$0x3] }
 0x15d   :  { %v2132_v28 = vperm.slane %v2130_v8, 0  ;;  %v2133_v35 = vperm.slane %v2130_v8, 1  ;;  %v4539_v8 = vld [vmem:[%s4850_s8] ss:$0 sm:$0xff] }
 0x15e   :  { %2490 = vmatmul.bf16.vlgmr.msra.gmra.mxu2 %v2064_v30 }
 0x15f   :  { %v1952_v33 = vpop.f32.mrf.mxu3  ;;  %2501 = vmatpush.bf16.msra.mxu3 %v4039_v36  ;;  %2792 = vmatpush.bf16.msra.mxu2 %v4531_v63 }
 0x163   :  { %2502 = vmatpush.bf16.msra.mxu3 %v4031_v32  ;;  %2793 = vmatpush.bf16.msra.mxu2 %v4530_v0 }
 0x167   :  { %2547 = vmatpush.bf16.msrb.mxu3 %v4091_v45  ;;  %v4515_v45 = vld [vmem:[%s4847_s5 + $0x38] sm:$0xff] }
 0x168   :  { %2696 = vmatpush.bf16.msra.mxu0 %v4515_v45 }
 0x16b   :  { %2548 = vmatpush.bf16.msrb.mxu3 %v4083_v42  ;;  %v4513_v42 = vld [vmem:[%s4847_s5 + $0x28] sm:$0xff] }
 0x16c   :  { %v1963_v52 = vpop.f32.mrf.mxu0  ;;  %2697 = vmatpush.bf16.msra.mxu0 %v4514_v38 }
 0x16d   :  { %v1964_v5 = vadd.f32 %v1963_v52, %v329_v61  ;;  %v4522_v52 = vld [vmem:[%s4847_s5 + $0x70] sm:$0xff]  ;;  %v4517_v61 = vld [vmem:[%s4847_s5 + $0x48] sm:$0xff] }
 0x16e   :  { %2542 = vmatmul.bf16.vlgmr.msrb.gmra.mxu2 %v2064_v30  ;;  %v1976_v48 = vpop.f32.mrf.mxu1  ;;  %2710 = vmatpush.bf16.msra.mxu1 %v4522_v52 }
 0x16f   :  { %2549 = vmatpush.bf16.msrb.mxu3 %v4075_v37  ;;  %v1977_v26 = vadd.f32 %v1976_v48, %v1964_v5 }
 0x170   :  { %2698 = vmatpush.bf16.msra.mxu0 %v4513_v42 }
 0x173   :  { %2550 = vmatpush.bf16.msrb.mxu3 %v4067_v57  ;;  %v4508_v57 = vld [vmem:[%s4847_s5] sm:$0xff] }
 0x174   :  { %v1989_v51 = vpop.f32.mrf.mxu2  ;;  %v1965_v56 = vpop.f32.mrf.mxu0  ;;  %2699 = vmatpush.bf16.msra.mxu0 %v4512_v49 }
 0x175   :  { %v1990_v22 = vadd.f32 %v1989_v51, %v1977_v26  ;;  %v4510_v51 = vld [vmem:[%s4847_s5 + $0x10] sm:$0xff]  ;;  %v4521_v56 = vld [vmem:[%s4847_s5 + $0x68] sm:$0xff] }
 0x176   :  { %v1978_v58 = vpop.f32.mrf.mxu1  ;;  %2711 = vmatpush.bf16.msra.mxu1 %v4521_v56 }
 0x177   :  { %v2002_v53 = vpop.f32.mrf.mxu3  ;;  %2551 = vmatpush.bf16.msrb.mxu3 %v4059_v62  ;;  %v4520_v58 = vld [vmem:[%s4847_s5 + $0x60] sm:$0xff] }
 0x178   :  { %v2003_v40 = vadd.f32 %v2002_v53, %v1990_v22  ;;  %2700 = vmatpush.bf16.msra.mxu0 %v4511_v50  ;;  %v4516_v62 = vld [vmem:[%s4847_s5 + $0x40] sm:$0xff] }
 0x17a   :  { %2712 = vmatpush.bf16.msra.mxu1 %v4520_v58 }
 0x17b   :  { %2552 = vmatpush.bf16.msrb.mxu3 %v4051_v18 }
 0x17c   :  { %v1991_v1 = vpop.f32.mrf.mxu2  ;;  %2701 = vmatpush.bf16.msra.mxu0 %v4510_v51 }
 0x17e   :  { %2713 = vmatpush.bf16.msra.mxu1 %v4519_v59 }
 0x17f   :  { %v2004_v2 = vpop.f32.mrf.mxu3  ;;  %2553 = vmatpush.bf16.msrb.mxu3 %v4043_v6 }
 0x180   :  { %2702 = vmatpush.bf16.msra.mxu0 %v4509_v55 }
 0x182   :  { %2714 = vmatpush.bf16.msra.mxu1 %v4518_v60 }
 0x183   :  { %2554 = vmatpush.bf16.msrb.mxu3 %v4035_v20 }
 0x184   :  { %2703 = vmatpush.bf16.msra.mxu0 %v4508_v57 }
 0x186   :  { %2715 = vmatpush.bf16.msra.mxu1 %v4517_v61 }
 0x18a   :  { %2716 = vmatpush.bf16.msra.mxu1 %v4516_v62 }
 0x18c   :  { %v2015_v9 = vpop.f32.mrf.mxu0 }
 0x18d   :  { %v2016_v10 = vadd.f32 %v2015_v9, %v2003_v40  ;;  %v4529_v40 = vld [vmem:[%s4849_s7 + $0x28] sm:$0xff]  ;;  %v4528_v9 = vld [vmem:[%s4849_s7 + $0x20] sm:$0xff] }
 0x18e   :  { %v2028_v47 = vpop.f32.mrf.mxu1  ;;  %2794 = vmatpush.bf16.msra.mxu2 %v4529_v40 }
 0x18f   :  { %v2029_v11 = vadd.f32 %v2028_v47, %v2016_v10  ;;  %v4527_v47 = vld [vmem:[%s4849_s7 + $0x18] sm:$0xff]  ;;  %v4526_v10 = vld [vmem:[%s4849_s7 + $0x10] sm:$0xff] }
 0x192   :  { %2795 = vmatpush.bf16.msra.mxu2 %v4528_v9 }
 0x194   :  { %v2041_v12 = vpop.f32.mrf.mxu2  ;;  %v2017_v15 = vpop.f32.mrf.mxu0 }
 0x195   :  { %v2042_v46 = vadd.f32 %v2041_v12, %v2029_v11  ;;  %v2054_v14 = vpop.f32.mrf.mxu3  ;;  %v4525_v11 = vld [vmem:[%s4849_s7 + $0x8] sm:$0xff]  ;;  %v4524_v12 = vld [vmem:[%s4849_s7] sm:$0xff] }
 0x196   :  { %v2030_v16 = vpop.f32.mrf.mxu1  ;;  %2796 = vmatpush.bf16.msra.mxu2 %v4527_v47  ;;  %v4538_v15 = vld [vmem:[%s4848_s6] ss:$0 sm:$0xff] }
 0x197   :  { %v2055_v17 = vadd.f32 %v2054_v14, %v2042_v46 }
 0x199   :  { %v2061_v21 = vmax.f32 %v2055_v17, 0.0 }
 0x19a   :  { %2797 = vmatpush.bf16.msra.mxu2 %v4526_v10 }
 0x19b   :  { %v2065_v23 = vpack.c.bf16 %v2061_v21, %v2061_v21 }
 0x19c   :  { %v2043_v25 = vpop.f32.mrf.mxu2 }
 0x19d   :  { %v2056_v27 = vpop.f32.mrf.mxu3  ;;  %2503 = vmatmul.bf16.vlgmr.msra.gmra.mxu3 %v2065_v23 }
 0x19e   :  { %2798 = vmatpush.bf16.msra.mxu2 %v4525_v11 }
 0x1a2   :  { %2799 = vmatpush.bf16.msra.mxu2 %v4524_v12 }
 0x1ac   :  { %v2465_v29 = vpop.f32.mrf.mxu0 }
 0x1ad   :  { %v2466_v30 = vadd.f32 %v2465_v29, %v2132_v28  ;;  %2555 = vmatmul.bf16.vlgmr.msrb.gmra.mxu3 %v2065_v23 }
 0x1ae   :  { %v2478_v31 = vpop.f32.mrf.mxu1 }
 0x1af   :  { %v2479_v13 = vadd.f32 %v2478_v31, %v2466_v30 }
 0x1b4   :  { %v2467_v33 = vpop.f32.mrf.mxu0 }
 0x1b6   :  { %v2480_v34 = vpop.f32.mrf.mxu1 }
 0x1cc   :  { %v2517_v36 = vpop.f32.mrf.mxu0 }
 0x1cd   :  { %v2518_v41 = vadd.f32 %v2517_v36, %v2133_v35 }
 0x1ce   :  { %v2530_v39 = vpop.f32.mrf.mxu1 }
 0x1cf   :  { %v2531_v32 = vadd.f32 %v2530_v39, %v2518_v41 }
 0x1d4   :  { %v2519_v24 = vpop.f32.mrf.mxu0 }
 0x1d6   :  { %v2532_v43 = vpop.f32.mrf.mxu1 }
 0x1e1   :  { %v2491_v48 = vpop.f32.mrf.mxu2 }
 0x1e2   :  { %v2492_v1 = vadd.f32 %v2491_v48, %v2479_v13 }
 0x1e9   :  { %v2493_v37 = vpop.f32.mrf.mxu2 }
 0x1f1   :  { %v2543_v53 = vpop.f32.mrf.mxu2 }
 0x1f2   :  { %v2544_v6 = vadd.f32 %v2543_v53, %v2531_v32 }
 0x1f9   :  { %v2545_v54 = vpop.f32.mrf.mxu2 }
 0x220   :  { %v2504_v2 = vpop.f32.mrf.mxu3 }
 0x221   :  { %v2505_v18 = vadd.f32 %v2504_v2, %v2492_v1 }
 0x223   :  { %v2560_v3 = vmax.f32 %v2505_v18, 0.0 }
 0x225   :  { %v2562_v4 = vpack.c.bf16 %v2560_v3, %v2560_v3 }
 0x227   :  { %2704 = vmatmul.bf16.vlgmr.msra.gmra.mxu0 %v2562_v4 }
 0x228   :  { %v2506_v5 = vpop.f32.mrf.mxu3 }
 0x230   :  { %v2556_v7 = vpop.f32.mrf.mxu3 }
 0x231   :  { %v2557_v19 = vadd.f32 %v2556_v7, %v2544_v6 }
 0x233   :  { %v2561_v26 = vmax.f32 %v2557_v19, 0.0 }
 0x235   :  { %v2563_v20 = vpack.c.bf16 %v2561_v26, %v2561_v26 }
 0x237   :  { %2717 = vmatmul.bf16.vlgmr.msra.gmra.mxu1 %v2563_v20 }
 0x238   :  { %v2558_v22 = vpop.f32.mrf.mxu3 }
 0x2a4   :  { %v2705_v46 = vpop.f32.mrf.mxu0 }
 0x2a5   :  { %v2706_v16 = vadd.f32 %v4538_v15, %v2705_v46 }
 0x2ac   :  { %v2707_v14 = vpop.f32.mrf.mxu0 }
 0x2b4   :  { %v2718_v17 = vpop.f32.mrf.mxu1 }
 0x2b5   :  { %v2719_v21 = vadd.f32 %v2718_v17, %v2706_v16 }
 0x2b7   :  { %v2722_v23 = vmax.f32 %v2719_v21, 0.0 }
 0x2b9   :  { %v2723_v25 = vpack.c.bf16 %v2722_v23, %v2722_v23 }
 0x2bb   :  { %2800 = vmatmul.bf16.vlgmr.msra.gmra.mxu2 %v2723_v25 }
 0x2bc   :  { %v2720_v27 = vpop.f32.mrf.mxu1 }
 0x33e   :  { %v2801_v28 = vpop.f32.mrf.mxu2 }
 0x33f   :  { %v2802_v29 = vadd.f32 %v4539_v8, %v2801_v28 }
 0x341   :  { %2805 = vst [vmem:[%s4851_s9] sm:$0xff] %v2802_v29 }
 0x346   :  { %v2803_v30 = vpop.f32.mrf.mxu2 }
 0x347   :  { %2810 = vsyncpa [#allocation3], 1 }
 0x348   :  { %2811 = vsyncpa [#allocation5], 1 }

</bundles_post_ra>
